<compile_context>
chip_gen: v6e
topology: v6e:2x2x1
jax: 0.10.0
libtpu: 0.0.40
codegen_flags: <defaults>
</compile_context>

<pallas_src>
import jax
import jax.numpy as jnp
from jax.experimental import pallas as pl
from jax.experimental.pallas import tpu as pltpu


# Kept f32 so the numerical check stays tight on every TPU generation and v5e's
# bf16-less VPU path adds no cast traffic.
# TODO(synk): gate MXU_INPUT_DTYPE = jnp.bfloat16 per-generation (v6e/v7x) when
# B/N/H scale; accumulation stays f32 via preferred_element_type.
MXU_INPUT_DTYPE = jnp.float32


def _dot(a, w):
    return jnp.dot(a.astype(MXU_INPUT_DTYPE), w.astype(MXU_INPUT_DTYPE),
                   preferred_element_type=jnp.float32)


# Row indices into the packed per-feature vector stack `vecs` (shape (12 + 4P, H)).
V_NE_B, V_NE_S, V_NE_T = 0, 1, 2
V_EE_B, V_EE_S, V_EE_T = 3, 4, 5
V_NP_B1, V_NP_B2, V_NP_S, V_NP_T = 6, 7, 8, 9
V_NPRD_B1, V_EPRD_B1 = 10, 11
V_EP_BASE = 12            # per pstep p: b1, b2, s, t at V_EP_BASE + 4*p + {0,1,2,3}

# Slab indices into the packed (H, H) weight stack `w_hh` (shape (5 + 2P, H, H)).
W_NP_AGG, W_NP_W2, W_NPRD_EFF, W_EPRD_EFF, W_EPRD_ENC = 0, 1, 2, 3, 4
W_EP_WE_BASE = 5          # ep_we[p] at 5 + p ; ep_w2[p] at 5 + P + p


# ---------------------------------------------------------------------------
# Pallas kernel: one batch element per grid step
# ---------------------------------------------------------------------------
def propnet_kernel(
    node_rep_ref,   # (1, N, Din)
    edge_rep_ref,   # (1, N, N, Ein)
    edge_type_ref,  # (1, N, N, 1)
    w_in_ref,       # (D, 4H)
    w_eff_ref,      # (P, H, 3H)
    w_enc2_ref,     # (H, 2H)
    w_hh_ref,       # (5 + 2P, H, H)
    vecs_ref,       # (12 + 4P, H)
    w_nout_ref,     # (H + 1, node_out)  [w2' ; b2']
    w_eout_ref,     # (H + 1, edge_out)  [w2' ; b2']
    node_pred_ref,  # (1, N, node_out)
    edge_pred_ref,  # (1, N, N, edge_out)
):
    _, N, Din = node_rep_ref.shape
    Ein = edge_rep_ref.shape[-1]
    H = w_enc2_ref.shape[0]
    P = w_eff_ref.shape[0]
    NN = N * N
    node_out = node_pred_ref.shape[-1]
    edge_out = edge_pred_ref.shape[-1]

    def vrow(i):                              # static (1, H) row of the vector stack
        return vecs_ref[pl.ds(i, 1), :]

    node_2d = node_rep_ref[...].reshape(N, Din)
    edge_2d = edge_rep_ref[...].reshape(NN, Ein)

    # edge_type lane-broadcast: computed once, reused for encoder + every pstep.
    etype2d = jnp.broadcast_to(edge_type_ref[...].reshape(NN, 1), (NN, H))

    # ---- fused input matmuls ----
    w_in = w_in_ref[...]
    x_node = _dot(node_2d, w_in[:Din, :3 * H])            # (N, 3H): [enc | ee_r | ee_s]
    x_edge = _dot(edge_2d, w_in[:Ein, 3 * H:])            # (NN, H)

    # node encoder: Linear -> ReLU -> BN(affine)
    node_enc2d = jnp.maximum(x_node[:, :H] + vrow(V_NE_B), 0.0)
    node_enc2d = node_enc2d * vrow(V_NE_S) + vrow(V_NE_T)  # (N, H)

    # edge encoder on cat([node_r, node_s, edge_rep]); ee_b added at the narrow
    # (N, H) receiver stage before the (N, N, H) broadcast-add.
    xr = (x_node[:, H:2 * H] + vrow(V_EE_B)).reshape(N, 1, H)
    xs = x_node[:, 2 * H:].reshape(1, N, H)
    edge_enc = jnp.maximum(xr + xs + x_edge.reshape(N, N, H), 0.0)
    edge_enc2d = edge_enc.reshape(NN, H) * vrow(V_EE_S) + vrow(V_EE_T)
    edge_enc2d = edge_enc2d * etype2d                      # (NN, H)

    # ---- loop-invariant node_enc matmuls, fused: [np_w1_enc | nprd_w1_enc] ----
    enc2 = _dot(node_enc2d, w_enc2_ref[...])               # (N, 2H)
    enc_term = enc2[:, :H] + vrow(V_NP_B1)                 # hoisted propagator term (+ b1)
    nprd_enc_term = enc2[:, H:]                            # hoisted predictor term

    np_w1_agg = w_hh_ref[W_NP_AGG]
    np_w2 = w_hh_ref[W_NP_W2]
    np_b2 = vrow(V_NP_B2)
    np_s = vrow(V_NP_S)
    np_t = vrow(V_NP_T)

    # ---- message passing (pstep rounds, statically unrolled; fine for P <= 3) ----
    node_eff2d = node_enc2d
    edge_eff2d = edge_enc2d
    for p in range(P):
        # fused (H, 3H) matmul on the shared input: [ep recv | ep send | np_w1_eff]
        rs = _dot(node_eff2d, w_eff_ref[p])                # (N, 3H)
        er = (rs[:, :H] + vrow(V_EP_BASE + 4 * p)).reshape(N, 1, H)   # + ep_b1[p]
        es = rs[:, H:2 * H].reshape(1, N, H)
        eo = _dot(edge_eff2d, w_hh_ref[W_EP_WE_BASE + p])  # (NN, H)
        h = jnp.maximum(er + es + eo.reshape(N, N, H), 0.0).reshape(NN, H)
        h = jnp.maximum(_dot(h, w_hh_ref[W_EP_WE_BASE + P + p])
                        + vrow(V_EP_BASE + 4 * p + 1), 0.0)
        h = h * vrow(V_EP_BASE + 4 * p + 2) + vrow(V_EP_BASE + 4 * p + 3)
        edge_eff2d = h * etype2d                           # (NN, H)

        # aggregate incoming messages over senders (axis 1 of (N, N, H)).
        # TODO(synk): for large N*H push this onto the MXU (dot with a ones selector);
        # at N=8, H=32 the sublane reduce is cheaper than the relayout it would need.
        agg = jnp.sum(edge_eff2d.reshape(N, N, H), axis=1)  # (N, H)

        npre = enc_term + rs[:, 2 * H:] + _dot(agg, np_w1_agg)
        nh = jnp.maximum(npre, 0.0)
        nh = jnp.maximum(_dot(nh, np_w2) + np_b2, 0.0)
        node_eff2d = nh * np_s + np_t                      # (N, H)

    # ---- node predictor: Linear(cat([eff, enc])) -> ReLU -> (BN folded into final) ----
    nh = jnp.maximum(_dot(node_eff2d, w_hh_ref[W_NPRD_EFF])
                     + nprd_enc_term + vrow(V_NPRD_B1), 0.0)
    w_n = w_nout_ref[...]                                  # (H+1, node_out)
    node_pred = _dot(nh, w_n[:H]) + w_n[H:]                # (N, node_out)
    # TODO(synk): node_out/edge_out = 4 -> final stores use 4/128 lanes; a lane-dense
    # relayout costs about what it saves at these tiny output dims.
    node_pred_ref[...] = node_pred.reshape(1, N, node_out)

    # ---- edge predictor: Linear(cat([eff, enc])) -> ReLU -> (BN folded into final) ----
    eh = jnp.maximum(_dot(edge_eff2d, w_hh_ref[W_EPRD_EFF])
                     + _dot(edge_enc2d, w_hh_ref[W_EPRD_ENC])
                     + vrow(V_EPRD_B1), 0.0)
    w_e = w_eout_ref[...]                                  # (H+1, edge_out)
    edge_pred = _dot(eh, w_e[:H]) + w_e[H:]                # (NN, edge_out)
    edge_pred_ref[...] = edge_pred.reshape(1, N, N, edge_out)


# ---------------------------------------------------------------------------
# One-time parameter packing (parameter-load time, NOT in the per-call jit path)
# ---------------------------------------------------------------------------
def pack_params(p):
    H = p["ne_w"].shape[1]
    P = p["ep_w1"].shape[0]
    Din = p["ne_w"].shape[0]
    Ein = p["ee_we"].shape[0]
    D = max(Din, Ein)

    def rows(w):  # zero-pad leading (input) dim to D so all four blocks stack
        return jnp.pad(w, ((0, D - w.shape[0]), (0, 0)))

    # (D, 4H): [ne_w | ee_wr | ee_ws | ee_we]; node path uses rows [:Din], edge [:Ein].
    w_in = jnp.concatenate(
        [rows(p["ne_w"]), rows(p["ee_wr"]), rows(p["ee_ws"]), rows(p["ee_we"])], axis=1)

    np_w1 = p["np_w1"]                                    # (3H, H): rows [enc | eff | agg]
    np_w1_enc, np_w1_eff, np_w1_agg = np_w1[:H], np_w1[H:2 * H], np_w1[2 * H:]
    ep_w1 = p["ep_w1"]                                    # (P, 3H, H): rows [recv|send|edge]

    # (P, H, 3H): per-step fused same-input matmul [ep_recv | ep_send | np_w1_eff].
    w_eff = jnp.concatenate(
        [ep_w1[:, :H, :], ep_w1[:, H:2 * H, :],
         jnp.broadcast_to(np_w1_eff[None], (P, H, H))], axis=2)

    # (H, 2H): loop-invariant fused matmul on node_enc: [np_w1_enc | nprd_w1_enc].
    w_enc2 = jnp.concatenate([np_w1_enc, p["nprd_w1"][H:]], axis=1)

    # (5 + 2P, H, H) — order must match the W_* constants.
    w_hh = jnp.stack(
        [np_w1_agg, p["np_w2"], p["nprd_w1"][:H], p["eprd_w1"][:H], p["eprd_w1"][H:]]
        + [ep_w1[i, 2 * H:, :] for i in range(P)]
        + [p["ep_w2"][i] for i in range(P)], axis=0)

    # (12 + 4P, H) — order must match the V_* constants.
    vec_rows = [p["ne_b"], p["ne_s"], p["ne_t"],
                p["ee_b"], p["ee_s"], p["ee_t"],
                p["np_b1"], p["np_b2"], p["np_s"], p["np_t"],
                p["nprd_b1"], p["eprd_b1"]]
    for i in range(P):
        vec_rows += [p["ep_b1"][i], p["ep_b2"][i], p["ep_s"][i], p["ep_t"][i]]
    vecs = jnp.concatenate([v.reshape(1, H) for v in vec_rows], axis=0)

    # Predictor BN affine folded into the final linear (exact at f32):
    #   (relu(x) * s + t) @ w2 + b2  ==  relu(x) @ (s.T * w2) + (t @ w2 + b2)
    def fold(w2, b2, s, t):
        return jnp.concatenate([w2 * s.reshape(H, 1), b2 + t @ w2], axis=0)  # (H+1, out)

    w_nout = fold(p["nprd_w2"], p["nprd_b2"], p["nprd_s"], p["nprd_t"])
    w_eout = fold(p["eprd_w2"], p["eprd_b2"], p["eprd_s"], p["eprd_t"])

    return {"w_in": w_in, "w_eff": w_eff, "w_enc2": w_enc2, "w_hh": w_hh,
            "vecs": vecs, "w_nout": w_nout, "w_eout": w_eout}


# ---------------------------------------------------------------------------
# Wrapper: one pallas_call, grid over B
# ---------------------------------------------------------------------------
@jax.jit
def propnet_forward(node_rep, edge_rep, edge_type, packed):
    B, N, Din = node_rep.shape
    Ein = edge_rep.shape[-1]
    node_out = packed["w_nout"].shape[-1]
    edge_out = packed["w_eout"].shape[-1]

    weights = (packed["w_in"], packed["w_eff"], packed["w_enc2"], packed["w_hh"],
               packed["vecs"], packed["w_nout"], packed["w_eout"])

    def wspec(arr):  # whole-array VMEM block, constant index map (DMA'd once)
        zeros = (0,) * arr.ndim
        return pl.BlockSpec(arr.shape, lambda b, z=zeros: z)

    return pl.pallas_call(
        propnet_kernel,
        grid=(B,),
        in_specs=[
            pl.BlockSpec((1, N, Din), lambda b: (b, 0, 0)),
            pl.BlockSpec((1, N, N, Ein), lambda b: (b, 0, 0, 0)),
            pl.BlockSpec((1, N, N, 1), lambda b: (b, 0, 0, 0)),
        ] + [wspec(w) for w in weights],
        out_specs=(
            pl.BlockSpec((1, N, node_out), lambda b: (b, 0, 0)),
            pl.BlockSpec((1, N, N, edge_out), lambda b: (b, 0, 0, 0)),
        ),
        out_shape=(
            jax.ShapeDtypeStruct((B, N, node_out), jnp.float32),
            jax.ShapeDtypeStruct((B, N, N, edge_out), jnp.float32),
        ),
        compiler_params=pltpu.CompilerParams(
            # One batch element per grid step: megacore-shards over B on v7x's two
            # TensorCores; near-free on single-core v5e/v6e.
            dimension_semantics=("parallel",),
            # Tiny here (<1 MiB live).  When scaling B*N^2*H, re-derive the re-tiling
            # threshold against v7x's 64 MiB physical VMEM (vs 128 MiB on v5e/v6e);
            # bf16 intermediates double that threshold.
            vmem_limit_bytes=32 * 1024 * 1024,
        ),
    )(node_rep, edge_rep, edge_type, *weights)


# ---------------------------------------------------------------------------
# Deterministic parameter initialisation (matching the PyTorch module's shapes)
# ---------------------------------------------------------------------------
def init_params(key, din, ein, H, node_out, edge_out, pstep):
    keys = iter(jax.random.split(key, 64))

    def lin(d_in, d_out):
        bound = 1.0 / (d_in ** 0.5)
        w = jax.random.uniform(next(keys), (d_in, d_out), jnp.float32, -bound, bound)
        b = jax.random.uniform(next(keys), (1, d_out), jnp.float32, -bound, bound)
        return w, b

    def bn(d):  # inference-mode BatchNorm1d as per-feature affine
        s = 1.0 + 0.1 * jax.random.normal(next(keys), (1, d), jnp.float32)
        t = 0.1 * jax.random.normal(next(keys), (1, d), jnp.float32)
        return s, t

    p = {}
    p["ne_w"], p["ne_b"] = lin(din, H)
    p["ne_s"], p["ne_t"] = bn(H)

    ee_w, p["ee_b"] = lin(2 * din + ein, H)
    p["ee_wr"], p["ee_ws"], p["ee_we"] = ee_w[:din], ee_w[din:2 * din], ee_w[2 * din:]
    p["ee_s"], p["ee_t"] = bn(H)

    p["np_w1"], p["np_b1"] = lin(3 * H, H)
    p["np_w2"], p["np_b2"] = lin(H, H)
    p["np_s"], p["np_t"] = bn(H)

    ep = {k: [] for k in ("w1", "b1", "w2", "b2", "s", "t")}
    for _ in range(pstep):
        w1, b1 = lin(3 * H, H)
        w2, b2 = lin(H, H)
        s, t = bn(H)
        ep["w1"].append(w1); ep["b1"].append(b1)
        ep["w2"].append(w2); ep["b2"].append(b2)
        ep["s"].append(s); ep["t"].append(t)
    for k, v in ep.items():
        p["ep_" + k] = jnp.stack(v, axis=0)

    p["nprd_w1"], p["nprd_b1"] = lin(2 * H, H)
    p["nprd_s"], p["nprd_t"] = bn(H)
    p["nprd_w2"], p["nprd_b2"] = lin(H, node_out)

    p["eprd_w1"], p["eprd_b1"] = lin(2 * H, H)
    p["eprd_s"], p["eprd_t"] = bn(H)
    p["eprd_w2"], p["eprd_b2"] = lin(H, edge_out)
    return p


# ---------------------------------------------------------------------------
# Pure-JAX reference (mirrors the PyTorch forward with explicit concats)
# ---------------------------------------------------------------------------
def ref_forward(node_rep, edge_rep, edge_type, p, pstep):
    B, N, Din = node_rep.shape
    H = p["ne_w"].shape[1]
    hp = jax.lax.Precision.HIGHEST
    dot = lambda a, w: jnp.dot(a, w, precision=hp)

    def mlp1(x, w, b, s, t):
        return jnp.maximum(dot(x, w) + b, 0.0) * s + t

    def mlp2(x, w1, b1, w2, b2, s, t):
        h = jnp.maximum(dot(x, w1) + b1, 0.0)
        return jnp.maximum(dot(h, w2) + b2, 0.0) * s + t

    ee_w = jnp.concatenate([p["ee_wr"], p["ee_ws"], p["ee_we"]], axis=0)

    node_enc = mlp1(node_rep.reshape(-1, Din),
                    p["ne_w"], p["ne_b"], p["ne_s"], p["ne_t"]).reshape(B, N, H)
    nr = jnp.broadcast_to(node_rep[:, :, None, :], (B, N, N, Din))
    ns = jnp.broadcast_to(node_rep[:, None, :, :], (B, N, N, Din))
    tmp = jnp.concatenate([nr, ns, edge_rep], axis=3).reshape(B * N * N, -1)
    edge_enc = mlp1(tmp, ee_w, p["ee_b"], p["ee_s"], p["ee_t"]).reshape(B, N, N, H) * edge_type

    node_effect, edge_effect = node_enc, edge_enc
    for i in range(pstep):
        er = jnp.broadcast_to(node_effect[:, :, None, :], (B, N, N, H))
        es = jnp.broadcast_to(node_effect[:, None, :, :], (B, N, N, H))
        tmp = jnp.concatenate([er, es, edge_effect], axis=3).reshape(B * N * N, 3 * H)
        edge_effect = mlp2(tmp, p["ep_w1"][i], p["ep_b1"][i], p["ep_w2"][i],
                           p["ep_b2"][i], p["ep_s"][i], p["ep_t"][i]).reshape(B, N, N, H)
        edge_effect = edge_effect * edge_type
        agg = edge_effect.sum(axis=2)
        tmp = jnp.concatenate([node_enc, node_effect, agg], axis=2).reshape(B * N, 3 * H)
        node_effect = mlp2(tmp, p["np_w1"], p["np_b1"], p["np_w2"], p["np_b2"],
                           p["np_s"], p["np_t"]).reshape(B, N, H)

    ncat = jnp.concatenate([node_effect, node_enc], axis=2).reshape(B * N, 2 * H)
    ecat = jnp.concatenate([edge_effect, edge_enc], axis=3).reshape(B * N * N, 2 * H)
    nh = jnp.maximum(dot(ncat, p["nprd_w1"]) + p["nprd_b1"], 0.0) * p["nprd_s"] + p["nprd_t"]
    node_pred = (dot(nh, p["nprd_w2"]) + p["nprd_b2"]).reshape(B, N, -1)
    eh = jnp.maximum(dot(ecat, p["eprd_w1"]) + p["eprd_b1"], 0.0) * p["eprd_s"] + p["eprd_t"]
    edge_pred = (dot(eh, p["eprd_w2"]) + p["eprd_b2"]).reshape(B, N, N, -1)
    return node_pred, edge_pred


# ---------------------------------------------------------------------------
if __name__ == "__main__":
    B, N = 2, 8
    DIN, EIN, H = 4, 4, 32
    NODE_OUT, EDGE_OUT = 4, 4
    PSTEP = 2  # edge_type_num = 1, start_idx = 0, batch_norm = 1 (inference)

    key = jax.random.PRNGKey(0)
    k_node, k_edge, k_type, k_param = jax.random.split(key, 4)
    node_rep = jax.random.normal(k_node, (B, N, DIN), jnp.float32)
    edge_rep = jax.random.normal(k_edge, (B, N, N, EIN), jnp.float32)
    edge_type = jax.nn.sigmoid(jax.random.normal(k_type, (B, N, N, 1), jnp.float32))
    params = init_params(k_param, DIN, EIN, H, NODE_OUT, EDGE_OUT, PSTEP)

    # One-time packing at parameter-load time (outside the jitted per-call path).
    packed = pack_params(params)

    node_pred, edge_pred = propnet_forward(node_rep, edge_rep, edge_type, packed)
    jax.block_until_ready((node_pred, edge_pred))

    ref_node, ref_edge = ref_forward(node_rep, edge_rep, edge_type, params, PSTEP)
    assert node_pred.shape == (B, N, NODE_OUT)
    assert edge_pred.shape == (B, N, N, EDGE_OUT)
    assert jnp.allclose(node_pred, ref_node, rtol=2e-2, atol=2e-2), \
        float(jnp.max(jnp.abs(node_pred - ref_node)))
    assert jnp.allclose(edge_pred, ref_edge, rtol=2e-2, atol=2e-2), \
        float(jnp.max(jnp.abs(edge_pred - ref_edge)))
    print("KERNEL_OK")
</pallas_src>

<mosaic_0001>
module attributes {stable_mosaic.version = 11 : i64} {
  func.func @propnet_kernel(%arg0: i32, %arg1: memref<1x8x4xf32, #tpu.memory_space<vmem>>, %arg2: memref<1x8x8x4xf32, #tpu.memory_space<vmem>>, %arg3: memref<1x8x8x1xf32, #tpu.memory_space<vmem>>, %arg4: memref<4x128xf32, #tpu.memory_space<vmem>>, %arg5: memref<2x32x96xf32, #tpu.memory_space<vmem>>, %arg6: memref<32x64xf32, #tpu.memory_space<vmem>>, %arg7: memref<9x32x32xf32, #tpu.memory_space<vmem>>, %arg8: memref<20x32xf32, #tpu.memory_space<vmem>>, %arg9: memref<33x4xf32, #tpu.memory_space<vmem>>, %arg10: memref<33x4xf32, #tpu.memory_space<vmem>>, %arg11: memref<1x8x4xf32, #tpu.memory_space<vmem>>, %arg12: memref<1x8x8x4xf32, #tpu.memory_space<vmem>>) attributes {dimension_semantics = [#tpu.dimension_semantics<parallel>], iteration_bounds = array<i64: 2>, scalar_prefetch = 0 : i64, scratch_operands = 0 : i64, tpu.core_type = #tpu.core_type<tc>, window_params = [{transform_indices = @transform_0, window_bounds = array<i64: 1, 8, 4>}, {transform_indices = @transform_1, window_bounds = array<i64: 1, 8, 8, 4>}, {transform_indices = @transform_2, window_bounds = array<i64: 1, 8, 8, 1>}, {pipeline_mode = #tpu.pipeline_mode<synchronous>, transform_indices = @transform_3, window_bounds = array<i64: 4, 128>}, {pipeline_mode = #tpu.pipeline_mode<synchronous>, transform_indices = @transform_4, window_bounds = array<i64: 2, 32, 96>}, {pipeline_mode = #tpu.pipeline_mode<synchronous>, transform_indices = @transform_5, window_bounds = array<i64: 32, 64>}, {pipeline_mode = #tpu.pipeline_mode<synchronous>, transform_indices = @transform_6, window_bounds = array<i64: 9, 32, 32>}, {pipeline_mode = #tpu.pipeline_mode<synchronous>, transform_indices = @transform_7, window_bounds = array<i64: 20, 32>}, {pipeline_mode = #tpu.pipeline_mode<synchronous>, transform_indices = @transform_8, window_bounds = array<i64: 33, 4>}, {pipeline_mode = #tpu.pipeline_mode<synchronous>, transform_indices = @transform_9, window_bounds = array<i64: 33, 4>}, {transform_indices = @transform_10, window_bounds = array<i64: 1, 8, 4>}, {transform_indices = @transform_11, window_bounds = array<i64: 1, 8, 8, 4>}]} {
    %c0 = arith.constant 0 : index
    %c0_0 = arith.constant 0 : index
    %c0_1 = arith.constant 0 : index
    %0 = vector.load %arg1[%c0, %c0_0, %c0_1] : memref<1x8x4xf32, #tpu.memory_space<vmem>>, vector<1x8x4xf32>
    %1 = vector.shape_cast %0 : vector<1x8x4xf32> to vector<8x4xf32>
    %c0_2 = arith.constant 0 : index
    %c0_3 = arith.constant 0 : index
    %c0_4 = arith.constant 0 : index
    %c0_5 = arith.constant 0 : index
    %2 = vector.load %arg2[%c0_2, %c0_3, %c0_4, %c0_5] : memref<1x8x8x4xf32, #tpu.memory_space<vmem>>, vector<1x8x8x4xf32>
    %3 = vector.shape_cast %2 : vector<1x8x8x4xf32> to vector<64x4xf32>
    %c0_6 = arith.constant 0 : index
    %c0_7 = arith.constant 0 : index
    %c0_8 = arith.constant 0 : index
    %c0_9 = arith.constant 0 : index
    %4 = vector.load %arg3[%c0_6, %c0_7, %c0_8, %c0_9] : memref<1x8x8x1xf32, #tpu.memory_space<vmem>>, vector<1x8x8x1xf32>
    %5 = vector.shape_cast %4 : vector<1x8x8x1xf32> to vector<64x1xf32>
    %6 = vector.shape_cast %5 : vector<64x1xf32> to vector<64x1xf32>
    %7 = vector.broadcast %6 : vector<64x1xf32> to vector<64x32xf32>
    %c0_10 = arith.constant 0 : index
    %c0_11 = arith.constant 0 : index
    %8 = vector.load %arg4[%c0_10, %c0_11] : memref<4x128xf32, #tpu.memory_space<vmem>>, vector<4x128xf32>
    %9 = vector.extract_strided_slice %8 {offsets = [0, 0], sizes = [4, 96], strides = [1, 1]} : vector<4x128xf32> to vector<4x96xf32>
    %cst = arith.constant dense<0.000000e+00> : vector<8x96xf32>
    %10 = tpu.matmul %1, %9, %cst {dimension_numbers = #tpu.dot_dimension_numbers<[1], [0], [0], [1], [0, 0, 1, 1], [], []>} : vector<8x4xf32>, vector<4x96xf32>, vector<8x96xf32> -> vector<8x96xf32>
    %11 = vector.extract_strided_slice %8 {offsets = [0, 96], sizes = [4, 32], strides = [1, 1]} : vector<4x128xf32> to vector<4x32xf32>
    %cst_12 = arith.constant dense<0.000000e+00> : vector<64x32xf32>
    %12 = tpu.matmul %3, %11, %cst_12 {dimension_numbers = #tpu.dot_dimension_numbers<[1], [0], [0], [1], [0, 0, 1, 1], [], []>} : vector<64x4xf32>, vector<4x32xf32>, vector<64x32xf32> -> vector<64x32xf32>
    %13 = vector.extract_strided_slice %10 {offsets = [0, 0], sizes = [8, 32], strides = [1, 1]} : vector<8x96xf32> to vector<8x32xf32>
    %c0_13 = arith.constant 0 : index
    %c0_14 = arith.constant 0 : index
    %14 = vector.load %arg8[%c0_13, %c0_14] : memref<20x32xf32, #tpu.memory_space<vmem>>, vector<1x32xf32>
    %15 = vector.broadcast %14 : vector<1x32xf32> to vector<8x32xf32>
    %16 = arith.addf %13, %15 : vector<8x32xf32>
    %cst_15 = arith.constant 0.000000e+00 : f32
    %17 = vector.broadcast %cst_15 : f32 to vector<8x32xf32>
    %18 = arith.maximumf %16, %17 : vector<8x32xf32>
    %c1 = arith.constant 1 : index
    %c0_16 = arith.constant 0 : index
    %19 = vector.load %arg8[%c1, %c0_16] : memref<20x32xf32, #tpu.memory_space<vmem>>, vector<1x32xf32>
    %20 = vector.broadcast %19 : vector<1x32xf32> to vector<8x32xf32>
    %21 = arith.mulf %18, %20 : vector<8x32xf32>
    %c2 = arith.constant 2 : index
    %c0_17 = arith.constant 0 : index
    %22 = vector.load %arg8[%c2, %c0_17] : memref<20x32xf32, #tpu.memory_space<vmem>>, vector<1x32xf32>
    %23 = vector.broadcast %22 : vector<1x32xf32> to vector<8x32xf32>
    %24 = arith.addf %21, %23 : vector<8x32xf32>
    %25 = vector.extract_strided_slice %10 {offsets = [0, 32], sizes = [8, 32], strides = [1, 1]} : vector<8x96xf32> to vector<8x32xf32>
    %c3 = arith.constant 3 : index
    %c0_18 = arith.constant 0 : index
    %26 = vector.load %arg8[%c3, %c0_18] : memref<20x32xf32, #tpu.memory_space<vmem>>, vector<1x32xf32>
    %27 = vector.broadcast %26 : vector<1x32xf32> to vector<8x32xf32>
    %28 = arith.addf %25, %27 : vector<8x32xf32>
    %29 = vector.shape_cast %28 : vector<8x32xf32> to vector<8x1x32xf32>
    %30 = vector.extract_strided_slice %10 {offsets = [0, 64], sizes = [8, 32], strides = [1, 1]} : vector<8x96xf32> to vector<8x32xf32>
    %31 = vector.shape_cast %30 : vector<8x32xf32> to vector<1x8x32xf32>
    %32 = vector.broadcast %29 : vector<8x1x32xf32> to vector<8x8x32xf32>
    %33 = vector.broadcast %31 : vector<1x8x32xf32> to vector<8x8x32xf32>
    %34 = arith.addf %32, %33 : vector<8x8x32xf32>
    %35 = vector.shape_cast %12 : vector<64x32xf32> to vector<8x8x32xf32>
    %36 = arith.addf %34, %35 : vector<8x8x32xf32>
    %cst_19 = arith.constant 0.000000e+00 : f32
    %37 = vector.broadcast %cst_19 : f32 to vector<8x8x32xf32>
    %38 = arith.maximumf %36, %37 : vector<8x8x32xf32>
    %39 = vector.shape_cast %38 : vector<8x8x32xf32> to vector<64x32xf32>
    %c4 = arith.constant 4 : index
    %c0_20 = arith.constant 0 : index
    %40 = vector.load %arg8[%c4, %c0_20] : memref<20x32xf32, #tpu.memory_space<vmem>>, vector<1x32xf32>
    %41 = vector.broadcast %40 : vector<1x32xf32> to vector<64x32xf32>
    %42 = arith.mulf %39, %41 : vector<64x32xf32>
    %c5 = arith.constant 5 : index
    %c0_21 = arith.constant 0 : index
    %43 = vector.load %arg8[%c5, %c0_21] : memref<20x32xf32, #tpu.memory_space<vmem>>, vector<1x32xf32>
    %44 = vector.broadcast %43 : vector<1x32xf32> to vector<64x32xf32>
    %45 = arith.addf %42, %44 : vector<64x32xf32>
    %46 = arith.mulf %45, %7 : vector<64x32xf32>
    %c0_22 = arith.constant 0 : index
    %c0_23 = arith.constant 0 : index
    %47 = vector.load %arg6[%c0_22, %c0_23] : memref<32x64xf32, #tpu.memory_space<vmem>>, vector<32x64xf32>
    %cst_24 = arith.constant dense<0.000000e+00> : vector<8x64xf32>
    %48 = tpu.matmul %24, %47, %cst_24 {dimension_numbers = #tpu.dot_dimension_numbers<[1], [0], [0], [1], [0, 0, 1, 1], [], []>} : vector<8x32xf32>, vector<32x64xf32>, vector<8x64xf32> -> vector<8x64xf32>
    %49 = vector.extract_strided_slice %48 {offsets = [0, 0], sizes = [8, 32], strides = [1, 1]} : vector<8x64xf32> to vector<8x32xf32>
    %c6 = arith.constant 6 : index
    %c0_25 = arith.constant 0 : index
    %50 = vector.load %arg8[%c6, %c0_25] : memref<20x32xf32, #tpu.memory_space<vmem>>, vector<1x32xf32>
    %51 = vector.broadcast %50 : vector<1x32xf32> to vector<8x32xf32>
    %52 = arith.addf %49, %51 : vector<8x32xf32>
    %53 = vector.extract_strided_slice %48 {offsets = [0, 32], sizes = [8, 32], strides = [1, 1]} : vector<8x64xf32> to vector<8x32xf32>
    %c0_26 = arith.constant 0 : index
    %c0_27 = arith.constant 0 : index
    %c0_28 = arith.constant 0 : index
    %54 = vector.load %arg7[%c0_26, %c0_27, %c0_28] : memref<9x32x32xf32, #tpu.memory_space<vmem>>, vector<1x32x32xf32>
    %55 = vector.shape_cast %54 : vector<1x32x32xf32> to vector<32x32xf32>
    %c1_29 = arith.constant 1 : index
    %c0_30 = arith.constant 0 : index
    %c0_31 = arith.constant 0 : index
    %56 = vector.load %arg7[%c1_29, %c0_30, %c0_31] : memref<9x32x32xf32, #tpu.memory_space<vmem>>, vector<1x32x32xf32>
    %57 = vector.shape_cast %56 : vector<1x32x32xf32> to vector<32x32xf32>
    %c7 = arith.constant 7 : index
    %c0_32 = arith.constant 0 : index
    %58 = vector.load %arg8[%c7, %c0_32] : memref<20x32xf32, #tpu.memory_space<vmem>>, vector<1x32xf32>
    %c8 = arith.constant 8 : index
    %c0_33 = arith.constant 0 : index
    %59 = vector.load %arg8[%c8, %c0_33] : memref<20x32xf32, #tpu.memory_space<vmem>>, vector<1x32xf32>
    %c9 = arith.constant 9 : index
    %c0_34 = arith.constant 0 : index
    %60 = vector.load %arg8[%c9, %c0_34] : memref<20x32xf32, #tpu.memory_space<vmem>>, vector<1x32xf32>
    %c0_35 = arith.constant 0 : index
    %c0_36 = arith.constant 0 : index
    %c0_37 = arith.constant 0 : index
    %61 = vector.load %arg5[%c0_35, %c0_36, %c0_37] : memref<2x32x96xf32, #tpu.memory_space<vmem>>, vector<1x32x96xf32>
    %62 = vector.shape_cast %61 : vector<1x32x96xf32> to vector<32x96xf32>
    %cst_38 = arith.constant dense<0.000000e+00> : vector<8x96xf32>
    %63 = tpu.matmul %24, %62, %cst_38 {dimension_numbers = #tpu.dot_dimension_numbers<[1], [0], [0], [1], [0, 0, 1, 1], [], []>} : vector<8x32xf32>, vector<32x96xf32>, vector<8x96xf32> -> vector<8x96xf32>
    %64 = vector.extract_strided_slice %63 {offsets = [0, 0], sizes = [8, 32], strides = [1, 1]} : vector<8x96xf32> to vector<8x32xf32>
    %c12 = arith.constant 12 : index
    %c0_39 = arith.constant 0 : index
    %65 = vector.load %arg8[%c12, %c0_39] : memref<20x32xf32, #tpu.memory_space<vmem>>, vector<1x32xf32>
    %66 = vector.broadcast %65 : vector<1x32xf32> to vector<8x32xf32>
    %67 = arith.addf %64, %66 : vector<8x32xf32>
    %68 = vector.shape_cast %67 : vector<8x32xf32> to vector<8x1x32xf32>
    %69 = vector.extract_strided_slice %63 {offsets = [0, 32], sizes = [8, 32], strides = [1, 1]} : vector<8x96xf32> to vector<8x32xf32>
    %70 = vector.shape_cast %69 : vector<8x32xf32> to vector<1x8x32xf32>
    %c5_40 = arith.constant 5 : index
    %c0_41 = arith.constant 0 : index
    %c0_42 = arith.constant 0 : index
    %71 = vector.load %arg7[%c5_40, %c0_41, %c0_42] : memref<9x32x32xf32, #tpu.memory_space<vmem>>, vector<1x32x32xf32>
    %72 = vector.shape_cast %71 : vector<1x32x32xf32> to vector<32x32xf32>
    %cst_43 = arith.constant dense<0.000000e+00> : vector<64x32xf32>
    %73 = tpu.matmul %46, %72, %cst_43 {dimension_numbers = #tpu.dot_dimension_numbers<[1], [0], [0], [1], [0, 0, 1, 1], [], []>} : vector<64x32xf32>, vector<32x32xf32>, vector<64x32xf32> -> vector<64x32xf32>
    %74 = vector.broadcast %68 : vector<8x1x32xf32> to vector<8x8x32xf32>
    %75 = vector.broadcast %70 : vector<1x8x32xf32> to vector<8x8x32xf32>
    %76 = arith.addf %74, %75 : vector<8x8x32xf32>
    %77 = vector.shape_cast %73 : vector<64x32xf32> to vector<8x8x32xf32>
    %78 = arith.addf %76, %77 : vector<8x8x32xf32>
    %cst_44 = arith.constant 0.000000e+00 : f32
    %79 = vector.broadcast %cst_44 : f32 to vector<8x8x32xf32>
    %80 = arith.maximumf %78, %79 : vector<8x8x32xf32>
    %81 = vector.shape_cast %80 : vector<8x8x32xf32> to vector<64x32xf32>
    %c7_45 = arith.constant 7 : index
    %c0_46 = arith.constant 0 : index
    %c0_47 = arith.constant 0 : index
    %82 = vector.load %arg7[%c7_45, %c0_46, %c0_47] : memref<9x32x32xf32, #tpu.memory_space<vmem>>, vector<1x32x32xf32>
    %83 = vector.shape_cast %82 : vector<1x32x32xf32> to vector<32x32xf32>
    %cst_48 = arith.constant dense<0.000000e+00> : vector<64x32xf32>
    %84 = tpu.matmul %81, %83, %cst_48 {dimension_numbers = #tpu.dot_dimension_numbers<[1], [0], [0], [1], [0, 0, 1, 1], [], []>} : vector<64x32xf32>, vector<32x32xf32>, vector<64x32xf32> -> vector<64x32xf32>
    %c13 = arith.constant 13 : index
    %c0_49 = arith.constant 0 : index
    %85 = vector.load %arg8[%c13, %c0_49] : memref<20x32xf32, #tpu.memory_space<vmem>>, vector<1x32xf32>
    %86 = vector.broadcast %85 : vector<1x32xf32> to vector<64x32xf32>
    %87 = arith.addf %84, %86 : vector<64x32xf32>
    %cst_50 = arith.constant 0.000000e+00 : f32
    %88 = vector.broadcast %cst_50 : f32 to vector<64x32xf32>
    %89 = arith.maximumf %87, %88 : vector<64x32xf32>
    %c14 = arith.constant 14 : index
    %c0_51 = arith.constant 0 : index
    %90 = vector.load %arg8[%c14, %c0_51] : memref<20x32xf32, #tpu.memory_space<vmem>>, vector<1x32xf32>
    %91 = vector.broadcast %90 : vector<1x32xf32> to vector<64x32xf32>
    %92 = arith.mulf %89, %91 : vector<64x32xf32>
    %c15 = arith.constant 15 : index
    %c0_52 = arith.constant 0 : index
    %93 = vector.load %arg8[%c15, %c0_52] : memref<20x32xf32, #tpu.memory_space<vmem>>, vector<1x32xf32>
    %94 = vector.broadcast %93 : vector<1x32xf32> to vector<64x32xf32>
    %95 = arith.addf %92, %94 : vector<64x32xf32>
    %96 = arith.mulf %95, %7 : vector<64x32xf32>
    %97 = vector.shape_cast %96 : vector<64x32xf32> to vector<8x8x32xf32>
    %cst_53 = arith.constant dense<0.000000e+00> : vector<8x32xf32>
    %98 = vector.multi_reduction <add>, %97, %cst_53 [1] : vector<8x8x32xf32> to vector<8x32xf32>
    %99 = vector.extract_strided_slice %63 {offsets = [0, 64], sizes = [8, 32], strides = [1, 1]} : vector<8x96xf32> to vector<8x32xf32>
    %100 = arith.addf %52, %99 : vector<8x32xf32>
    %cst_54 = arith.constant dense<0.000000e+00> : vector<8x32xf32>
    %101 = tpu.matmul %98, %55, %cst_54 {dimension_numbers = #tpu.dot_dimension_numbers<[1], [0], [0], [1], [0, 0, 1, 1], [], []>} : vector<8x32xf32>, vector<32x32xf32>, vector<8x32xf32> -> vector<8x32xf32>
    %102 = arith.addf %100, %101 : vector<8x32xf32>
    %cst_55 = arith.constant 0.000000e+00 : f32
    %103 = vector.broadcast %cst_55 : f32 to vector<8x32xf32>
    %104 = arith.maximumf %102, %103 : vector<8x32xf32>
    %cst_56 = arith.constant dense<0.000000e+00> : vector<8x32xf32>
    %105 = tpu.matmul %104, %57, %cst_56 {dimension_numbers = #tpu.dot_dimension_numbers<[1], [0], [0], [1], [0, 0, 1, 1], [], []>} : vector<8x32xf32>, vector<32x32xf32>, vector<8x32xf32> -> vector<8x32xf32>
    %106 = vector.broadcast %58 : vector<1x32xf32> to vector<8x32xf32>
    %107 = arith.addf %105, %106 : vector<8x32xf32>
    %cst_57 = arith.constant 0.000000e+00 : f32
    %108 = vector.broadcast %cst_57 : f32 to vector<8x32xf32>
    %109 = arith.maximumf %107, %108 : vector<8x32xf32>
    %110 = vector.broadcast %59 : vector<1x32xf32> to vector<8x32xf32>
    %111 = arith.mulf %109, %110 : vector<8x32xf32>
    %112 = vector.broadcast %60 : vector<1x32xf32> to vector<8x32xf32>
    %113 = arith.addf %111, %112 : vector<8x32xf32>
    %c1_58 = arith.constant 1 : index
    %c0_59 = arith.constant 0 : index
    %c0_60 = arith.constant 0 : index
    %114 = vector.load %arg5[%c1_58, %c0_59, %c0_60] : memref<2x32x96xf32, #tpu.memory_space<vmem>>, vector<1x32x96xf32>
    %115 = vector.shape_cast %114 : vector<1x32x96xf32> to vector<32x96xf32>
    %cst_61 = arith.constant dense<0.000000e+00> : vector<8x96xf32>
    %116 = tpu.matmul %113, %115, %cst_61 {dimension_numbers = #tpu.dot_dimension_numbers<[1], [0], [0], [1], [0, 0, 1, 1], [], []>} : vector<8x32xf32>, vector<32x96xf32>, vector<8x96xf32> -> vector<8x96xf32>
    %117 = vector.extract_strided_slice %116 {offsets = [0, 0], sizes = [8, 32], strides = [1, 1]} : vector<8x96xf32> to vector<8x32xf32>
    %c16 = arith.constant 16 : index
    %c0_62 = arith.constant 0 : index
    %118 = vector.load %arg8[%c16, %c0_62] : memref<20x32xf32, #tpu.memory_space<vmem>>, vector<1x32xf32>
    %119 = vector.broadcast %118 : vector<1x32xf32> to vector<8x32xf32>
    %120 = arith.addf %117, %119 : vector<8x32xf32>
    %121 = vector.shape_cast %120 : vector<8x32xf32> to vector<8x1x32xf32>
    %122 = vector.extract_strided_slice %116 {offsets = [0, 32], sizes = [8, 32], strides = [1, 1]} : vector<8x96xf32> to vector<8x32xf32>
    %123 = vector.shape_cast %122 : vector<8x32xf32> to vector<1x8x32xf32>
    %c6_63 = arith.constant 6 : index
    %c0_64 = arith.constant 0 : index
    %c0_65 = arith.constant 0 : index
    %124 = vector.load %arg7[%c6_63, %c0_64, %c0_65] : memref<9x32x32xf32, #tpu.memory_space<vmem>>, vector<1x32x32xf32>
    %125 = vector.shape_cast %124 : vector<1x32x32xf32> to vector<32x32xf32>
    %cst_66 = arith.constant dense<0.000000e+00> : vector<64x32xf32>
    %126 = tpu.matmul %96, %125, %cst_66 {dimension_numbers = #tpu.dot_dimension_numbers<[1], [0], [0], [1], [0, 0, 1, 1], [], []>} : vector<64x32xf32>, vector<32x32xf32>, vector<64x32xf32> -> vector<64x32xf32>
    %127 = vector.broadcast %121 : vector<8x1x32xf32> to vector<8x8x32xf32>
    %128 = vector.broadcast %123 : vector<1x8x32xf32> to vector<8x8x32xf32>
    %129 = arith.addf %127, %128 : vector<8x8x32xf32>
    %130 = vector.shape_cast %126 : vector<64x32xf32> to vector<8x8x32xf32>
    %131 = arith.addf %129, %130 : vector<8x8x32xf32>
    %cst_67 = arith.constant 0.000000e+00 : f32
    %132 = vector.broadcast %cst_67 : f32 to vector<8x8x32xf32>
    %133 = arith.maximumf %131, %132 : vector<8x8x32xf32>
    %134 = vector.shape_cast %133 : vector<8x8x32xf32> to vector<64x32xf32>
    %c8_68 = arith.constant 8 : index
    %c0_69 = arith.constant 0 : index
    %c0_70 = arith.constant 0 : index
    %135 = vector.load %arg7[%c8_68, %c0_69, %c0_70] : memref<9x32x32xf32, #tpu.memory_space<vmem>>, vector<1x32x32xf32>
    %136 = vector.shape_cast %135 : vector<1x32x32xf32> to vector<32x32xf32>
    %cst_71 = arith.constant dense<0.000000e+00> : vector<64x32xf32>
    %137 = tpu.matmul %134, %136, %cst_71 {dimension_numbers = #tpu.dot_dimension_numbers<[1], [0], [0], [1], [0, 0, 1, 1], [], []>} : vector<64x32xf32>, vector<32x32xf32>, vector<64x32xf32> -> vector<64x32xf32>
    %c17 = arith.constant 17 : index
    %c0_72 = arith.constant 0 : index
    %138 = vector.load %arg8[%c17, %c0_72] : memref<20x32xf32, #tpu.memory_space<vmem>>, vector<1x32xf32>
    %139 = vector.broadcast %138 : vector<1x32xf32> to vector<64x32xf32>
    %140 = arith.addf %137, %139 : vector<64x32xf32>
    %cst_73 = arith.constant 0.000000e+00 : f32
    %141 = vector.broadcast %cst_73 : f32 to vector<64x32xf32>
    %142 = arith.maximumf %140, %141 : vector<64x32xf32>
    %c18 = arith.constant 18 : index
    %c0_74 = arith.constant 0 : index
    %143 = vector.load %arg8[%c18, %c0_74] : memref<20x32xf32, #tpu.memory_space<vmem>>, vector<1x32xf32>
    %144 = vector.broadcast %143 : vector<1x32xf32> to vector<64x32xf32>
    %145 = arith.mulf %142, %144 : vector<64x32xf32>
    %c19 = arith.constant 19 : index
    %c0_75 = arith.constant 0 : index
    %146 = vector.load %arg8[%c19, %c0_75] : memref<20x32xf32, #tpu.memory_space<vmem>>, vector<1x32xf32>
    %147 = vector.broadcast %146 : vector<1x32xf32> to vector<64x32xf32>
    %148 = arith.addf %145, %147 : vector<64x32xf32>
    %149 = arith.mulf %148, %7 : vector<64x32xf32>
    %150 = vector.shape_cast %149 : vector<64x32xf32> to vector<8x8x32xf32>
    %cst_76 = arith.constant dense<0.000000e+00> : vector<8x32xf32>
    %151 = vector.multi_reduction <add>, %150, %cst_76 [1] : vector<8x8x32xf32> to vector<8x32xf32>
    %152 = vector.extract_strided_slice %116 {offsets = [0, 64], sizes = [8, 32], strides = [1, 1]} : vector<8x96xf32> to vector<8x32xf32>
    %153 = arith.addf %52, %152 : vector<8x32xf32>
    %cst_77 = arith.constant dense<0.000000e+00> : vector<8x32xf32>
    %154 = tpu.matmul %151, %55, %cst_77 {dimension_numbers = #tpu.dot_dimension_numbers<[1], [0], [0], [1], [0, 0, 1, 1], [], []>} : vector<8x32xf32>, vector<32x32xf32>, vector<8x32xf32> -> vector<8x32xf32>
    %155 = arith.addf %153, %154 : vector<8x32xf32>
    %cst_78 = arith.constant 0.000000e+00 : f32
    %156 = vector.broadcast %cst_78 : f32 to vector<8x32xf32>
    %157 = arith.maximumf %155, %156 : vector<8x32xf32>
    %cst_79 = arith.constant dense<0.000000e+00> : vector<8x32xf32>
    %158 = tpu.matmul %157, %57, %cst_79 {dimension_numbers = #tpu.dot_dimension_numbers<[1], [0], [0], [1], [0, 0, 1, 1], [], []>} : vector<8x32xf32>, vector<32x32xf32>, vector<8x32xf32> -> vector<8x32xf32>
    %159 = vector.broadcast %58 : vector<1x32xf32> to vector<8x32xf32>
    %160 = arith.addf %158, %159 : vector<8x32xf32>
    %cst_80 = arith.constant 0.000000e+00 : f32
    %161 = vector.broadcast %cst_80 : f32 to vector<8x32xf32>
    %162 = arith.maximumf %160, %161 : vector<8x32xf32>
    %163 = vector.broadcast %59 : vector<1x32xf32> to vector<8x32xf32>
    %164 = arith.mulf %162, %163 : vector<8x32xf32>
    %165 = vector.broadcast %60 : vector<1x32xf32> to vector<8x32xf32>
    %166 = arith.addf %164, %165 : vector<8x32xf32>
    %c2_81 = arith.constant 2 : index
    %c0_82 = arith.constant 0 : index
    %c0_83 = arith.constant 0 : index
    %167 = vector.load %arg7[%c2_81, %c0_82, %c0_83] : memref<9x32x32xf32, #tpu.memory_space<vmem>>, vector<1x32x32xf32>
    %168 = vector.shape_cast %167 : vector<1x32x32xf32> to vector<32x32xf32>
    %cst_84 = arith.constant dense<0.000000e+00> : vector<8x32xf32>
    %169 = tpu.matmul %166, %168, %cst_84 {dimension_numbers = #tpu.dot_dimension_numbers<[1], [0], [0], [1], [0, 0, 1, 1], [], []>} : vector<8x32xf32>, vector<32x32xf32>, vector<8x32xf32> -> vector<8x32xf32>
    %170 = arith.addf %169, %53 : vector<8x32xf32>
    %c10 = arith.constant 10 : index
    %c0_85 = arith.constant 0 : index
    %171 = vector.load %arg8[%c10, %c0_85] : memref<20x32xf32, #tpu.memory_space<vmem>>, vector<1x32xf32>
    %172 = vector.broadcast %171 : vector<1x32xf32> to vector<8x32xf32>
    %173 = arith.addf %170, %172 : vector<8x32xf32>
    %cst_86 = arith.constant 0.000000e+00 : f32
    %174 = vector.broadcast %cst_86 : f32 to vector<8x32xf32>
    %175 = arith.maximumf %173, %174 : vector<8x32xf32>
    %c0_87 = arith.constant 0 : index
    %c0_88 = arith.constant 0 : index
    %176 = vector.load %arg9[%c0_87, %c0_88] : memref<33x4xf32, #tpu.memory_space<vmem>>, vector<33x4xf32>
    %177 = vector.extract_strided_slice %176 {offsets = [0, 0], sizes = [32, 4], strides = [1, 1]} : vector<33x4xf32> to vector<32x4xf32>
    %cst_89 = arith.constant dense<0.000000e+00> : vector<8x4xf32>
    %178 = tpu.matmul %175, %177, %cst_89 {dimension_numbers = #tpu.dot_dimension_numbers<[1], [0], [0], [1], [0, 0, 1, 1], [], []>} : vector<8x32xf32>, vector<32x4xf32>, vector<8x4xf32> -> vector<8x4xf32>
    %179 = vector.extract_strided_slice %176 {offsets = [32, 0], sizes = [1, 4], strides = [1, 1]} : vector<33x4xf32> to vector<1x4xf32>
    %180 = vector.broadcast %179 : vector<1x4xf32> to vector<8x4xf32>
    %181 = arith.addf %178, %180 : vector<8x4xf32>
    %182 = vector.shape_cast %181 : vector<8x4xf32> to vector<1x8x4xf32>
    %c0_90 = arith.constant 0 : index
    %c0_91 = arith.constant 0 : index
    %c0_92 = arith.constant 0 : index
    %183 = vector.load %arg11[%c0_90, %c0_91, %c0_92] : memref<1x8x4xf32, #tpu.memory_space<vmem>>, vector<1x8x4xf32>
    tpu.vector_store %arg11[%c0_90, %c0_91, %c0_92], %182 {strides = array<i32>} : memref<1x8x4xf32, #tpu.memory_space<vmem>>, vector<1x8x4xf32>,
    %c3_93 = arith.constant 3 : index
    %c0_94 = arith.constant 0 : index
    %c0_95 = arith.constant 0 : index
    %184 = vector.load %arg7[%c3_93, %c0_94, %c0_95] : memref<9x32x32xf32, #tpu.memory_space<vmem>>, vector<1x32x32xf32>
    %185 = vector.shape_cast %184 : vector<1x32x32xf32> to vector<32x32xf32>
    %cst_96 = arith.constant dense<0.000000e+00> : vector<64x32xf32>
    %186 = tpu.matmul %149, %185, %cst_96 {dimension_numbers = #tpu.dot_dimension_numbers<[1], [0], [0], [1], [0, 0, 1, 1], [], []>} : vector<64x32xf32>, vector<32x32xf32>, vector<64x32xf32> -> vector<64x32xf32>
    %c4_97 = arith.constant 4 : index
    %c0_98 = arith.constant 0 : index
    %c0_99 = arith.constant 0 : index
    %187 = vector.load %arg7[%c4_97, %c0_98, %c0_99] : memref<9x32x32xf32, #tpu.memory_space<vmem>>, vector<1x32x32xf32>
    %188 = vector.shape_cast %187 : vector<1x32x32xf32> to vector<32x32xf32>
    %cst_100 = arith.constant dense<0.000000e+00> : vector<64x32xf32>
    %189 = tpu.matmul %46, %188, %cst_100 {dimension_numbers = #tpu.dot_dimension_numbers<[1], [0], [0], [1], [0, 0, 1, 1], [], []>} : vector<64x32xf32>, vector<32x32xf32>, vector<64x32xf32> -> vector<64x32xf32>
    %190 = arith.addf %186, %189 : vector<64x32xf32>
    %c11 = arith.constant 11 : index
    %c0_101 = arith.constant 0 : index
    %191 = vector.load %arg8[%c11, %c0_101] : memref<20x32xf32, #tpu.memory_space<vmem>>, vector<1x32xf32>
    %192 = vector.broadcast %191 : vector<1x32xf32> to vector<64x32xf32>
    %193 = arith.addf %190, %192 : vector<64x32xf32>
    %cst_102 = arith.constant 0.000000e+00 : f32
    %194 = vector.broadcast %cst_102 : f32 to vector<64x32xf32>
    %195 = arith.maximumf %193, %194 : vector<64x32xf32>
    %c0_103 = arith.constant 0 : index
    %c0_104 = arith.constant 0 : index
    %196 = vector.load %arg10[%c0_103, %c0_104] : memref<33x4xf32, #tpu.memory_space<vmem>>, vector<33x4xf32>
    %197 = vector.extract_strided_slice %196 {offsets = [0, 0], sizes = [32, 4], strides = [1, 1]} : vector<33x4xf32> to vector<32x4xf32>
    %cst_105 = arith.constant dense<0.000000e+00> : vector<64x4xf32>
    %198 = tpu.matmul %195, %197, %cst_105 {dimension_numbers = #tpu.dot_dimension_numbers<[1], [0], [0], [1], [0, 0, 1, 1], [], []>} : vector<64x32xf32>, vector<32x4xf32>, vector<64x4xf32> -> vector<64x4xf32>
    %199 = vector.extract_strided_slice %196 {offsets = [32, 0], sizes = [1, 4], strides = [1, 1]} : vector<33x4xf32> to vector<1x4xf32>
    %200 = vector.broadcast %199 : vector<1x4xf32> to vector<64x4xf32>
    %201 = arith.addf %198, %200 : vector<64x4xf32>
    %202 = vector.shape_cast %201 : vector<64x4xf32> to vector<1x8x8x4xf32>
    %c0_106 = arith.constant 0 : index
    %c0_107 = arith.constant 0 : index
    %c0_108 = arith.constant 0 : index
    %c0_109 = arith.constant 0 : index
    %203 = vector.load %arg12[%c0_106, %c0_107, %c0_108, %c0_109] : memref<1x8x8x4xf32, #tpu.memory_space<vmem>>, vector<1x8x8x4xf32>
    tpu.vector_store %arg12[%c0_106, %c0_107, %c0_108, %c0_109], %202 {strides = array<i32>} : memref<1x8x8x4xf32, #tpu.memory_space<vmem>>, vector<1x8x8x4xf32>,
    return
  }
  func.func @transform_0(%arg0: i32) -> (i32, i32, i32) {
    %c0_i32 = arith.constant 0 : i32
    %c0_i32_0 = arith.constant 0 : i32
    %c0_i32_1 = arith.constant 0 : i32
    return %arg0, %c0_i32, %c0_i32_0 : i32, i32, i32
  }
  func.func @transform_1(%arg0: i32) -> (i32, i32, i32, i32) {
    %c0_i32 = arith.constant 0 : i32
    %c0_i32_0 = arith.constant 0 : i32
    %c0_i32_1 = arith.constant 0 : i32
    %c0_i32_2 = arith.constant 0 : i32
    return %arg0, %c0_i32, %c0_i32_0, %c0_i32_1 : i32, i32, i32, i32
  }
  func.func @transform_2(%arg0: i32) -> (i32, i32, i32, i32) {
    %c0_i32 = arith.constant 0 : i32
    %c0_i32_0 = arith.constant 0 : i32
    %c0_i32_1 = arith.constant 0 : i32
    %c0_i32_2 = arith.constant 0 : i32
    return %arg0, %c0_i32, %c0_i32_0, %c0_i32_1 : i32, i32, i32, i32
  }
  func.func @transform_3(%arg0: i32) -> (i32, i32) {
    %c0_i32 = arith.constant 0 : i32
    %c0_i32_0 = arith.constant 0 : i32
    %c0_i32_1 = arith.constant 0 : i32
    return %c0_i32, %c0_i32_0 : i32, i32
  }
  func.func @transform_4(%arg0: i32) -> (i32, i32, i32) {
    %c0_i32 = arith.constant 0 : i32
    %c0_i32_0 = arith.constant 0 : i32
    %c0_i32_1 = arith.constant 0 : i32
    %c0_i32_2 = arith.constant 0 : i32
    return %c0_i32, %c0_i32_0, %c0_i32_1 : i32, i32, i32
  }
  func.func @transform_5(%arg0: i32) -> (i32, i32) {
    %c0_i32 = arith.constant 0 : i32
    %c0_i32_0 = arith.constant 0 : i32
    %c0_i32_1 = arith.constant 0 : i32
    return %c0_i32, %c0_i32_0 : i32, i32
  }
  func.func @transform_6(%arg0: i32) -> (i32, i32, i32) {
    %c0_i32 = arith.constant 0 : i32
    %c0_i32_0 = arith.constant 0 : i32
    %c0_i32_1 = arith.constant 0 : i32
    %c0_i32_2 = arith.constant 0 : i32
    return %c0_i32, %c0_i32_0, %c0_i32_1 : i32, i32, i32
  }
  func.func @transform_7(%arg0: i32) -> (i32, i32) {
    %c0_i32 = arith.constant 0 : i32
    %c0_i32_0 = arith.constant 0 : i32
    %c0_i32_1 = arith.constant 0 : i32
    return %c0_i32, %c0_i32_0 : i32, i32
  }
  func.func @transform_8(%arg0: i32) -> (i32, i32) {
    %c0_i32 = arith.constant 0 : i32
    %c0_i32_0 = arith.constant 0 : i32
    %c0_i32_1 = arith.constant 0 : i32
    return %c0_i32, %c0_i32_0 : i32, i32
  }
  func.func @transform_9(%arg0: i32) -> (i32, i32) {
    %c0_i32 = arith.constant 0 : i32
    %c0_i32_0 = arith.constant 0 : i32
    %c0_i32_1 = arith.constant 0 : i32
    return %c0_i32, %c0_i32_0 : i32, i32
  }
  func.func @transform_10(%arg0: i32) -> (i32, i32, i32) {
    %c0_i32 = arith.constant 0 : i32
    %c0_i32_0 = arith.constant 0 : i32
    %c0_i32_1 = arith.constant 0 : i32
    return %arg0, %c0_i32, %c0_i32_0 : i32, i32, i32
  }
  func.func @transform_11(%arg0: i32) -> (i32, i32, i32, i32) {
    %c0_i32 = arith.constant 0 : i32
    %c0_i32_0 = arith.constant 0 : i32
    %c0_i32_1 = arith.constant 0 : i32
    %c0_i32_2 = arith.constant 0 : i32
    return %arg0, %c0_i32, %c0_i32_0, %c0_i32_1 : i32, i32, i32, i32
  }
}

</mosaic_0001>

<bundles_post_ra>
// kernel: propnet_forward.1
= control target key start
LH: loop header
LB: loop body
LE: loop exit
PB: predicated region body
PF: predicated region fallthrough
CT: control target
= control target key end

     0   :  { %s3871_s17 = smov 0   ;;  %s4645_s0 = inlined_call_operand.vmem [shape: f32[2,8,4], index: 0, kind: input, shape index: {}]   ;;  %s4646_s1 = inlined_call_operand.vmem [shape: f32[2,8,8,4], index: 1, kind: input, shape index: {}]   ;;  %s4647_s2 = inlined_call_operand.vmem [shape: f32[2,8,8,1], index: 2, kind: input, shape index: {}]   ;;  %s4648_s3 = inlined_call_operand.vmem [shape: f32[4,128], index: 3, kind: input, shape index: {}]   ;;  %s4649_s4 = inlined_call_operand.vmem [shape: f32[2,32,96], index: 4, kind: input, shape index: {}]   ;;  %s4650_s5 = inlined_call_operand.vmem [shape: f32[32,64], index: 5, kind: input, shape index: {}]   ;;  %s4651_s6 = inlined_call_operand.vmem [shape: f32[9,32,32], index: 6, kind: input, shape index: {}]   ;;  %s4652_s7 = inlined_call_operand.vmem [shape: f32[20,32], index: 7, kind: input, shape index: {}]   ;;  %s4653_s8 = inlined_call_operand.vmem [shape: f32[33,4], index: 8, kind: input, shape index: {}]   ;;  %s4654_s9 = inlined_call_operand.vmem [shape: f32[33,4], index: 9, kind: input, shape index: {}]   ;;  %s4655_s10 = inlined_call_operand.vmem [shape: f32[2,8,4], index: 10, kind: output, shape index: {0}]   ;;  %s4656_s11 = inlined_call_operand.vmem [shape: f32[2,8,8,4], index: 11, kind: output, shape index: {1}]  }
   0x1 LB: > { %s3229_s18 = sadd.s32 4294967295, %s3802_s17   ;;  %p3233_p0 = scmp.ge.s32.totalorder %s3802_s17, 1  ;;  %s3802_s17 = sphi %s3871_s17, %s22_s17  }
   0x2   : > { %p359_p1 = scmp.lt.s32.totalorder %s3802_s17, 3 }
   0x4   : > { %p360_p2 = pnand %p3233_p0, %p359_p1 }
   0x5   : > { %s3804_s21 = smov (!%p360_p2), 32   ;;  %p412_p3 = scmp.lt.s32.totalorder (!%p360_p2), %s3229_s18, 1 }
   0x6   : > { %363 = sbr.rel (%p360_p2) target bundleno = 2964 (0xb94), region = 60  ;;  %s3808_s30 = smov (!%p360_p2), 96  }
   0xb   : > { %v492_v0 = vld [vmem:[%s4648_s3] sm:$0xf]  ;;  %vm497_vm0 = vcmask 1043456   ;;  %v3805_v1 = vmov 0.0   ;;  %vm3806_vm1 = vmmov 0   ;;  %s4658_s18 = smov (!%p412_p3, %s3229_s18), 1  ;;  %v738_v54 = vlaneseq }
   0xc   : > { %571 = vrot.lane.b32.xlu0 %v492_v0, %s3804_s21  ;;  %3521 = vmatprep.subr.mxu0 %v3805_v1  ;;  %v3807_v2 = vmov 0   ;;  %v3256_v3 = vld [vmem:[%s4652_s7 + $0x3] ss:$0 sm:$0xff]  ;;  %s3234_s24 = sshll.u32 %s4658_s18, 3  ;;  %s3895_s25 = sshll.u32 %s4658_s18, 6  ;;  %vm493_vm2 = vcmask 31744  }
   0xd   : > { %3522 = vmatpush3.msk.msra.mxu0 %vm497_vm0, %v492_v0  ;;  %3523 = vmatprep.mubr.msk.f32.mxu0 %vm3806_vm1, %v3805_v1  ;;  %s415_s28 = scalar_lea.vmem %s4645_s0, %s3234_s24  ;;  %s3907_s12 = scalar_lea.vmem %s4646_s1, %s3895_s25  ;;  %v3257_v7 = vld [vmem:[%s4652_s7 + $0x4] ss:$0 sm:$0xff]  ;;  %v3258_v8 = vld [vmem:[%s4652_s7 + $0x5] ss:$0 sm:$0xff]  ;;  %v1024_v11 = vld [vmem:[%s4649_s4 + $0x18] sm:$0xff]  ;;  %vm929_vm3 = vcmask 261120  }
   0xe   : > { %3794 = vset.pattern.permute.xlu1 %v3807_v2  ;;  %3551 = vmatprep.subr.mxu0 %v3805_v1  ;;  %s3913_s15 = scalar_lea.vmem %s4647_s2, %s3895_s25  ;;  %v435_v4 = vld [vmem:[%s415_s28] sm:$0xff]  ;;  %v1023_v12 = vld [vmem:[%s4649_s4 + $0x10] sm:$0xff]  ;;  %v1022_v13 = vld [vmem:[%s4649_s4 + $0x8] sm:$0xff]  ;;  %v3809_v52 = vmov 1966171168   ;;  %v739_v57 = vshrl.u32 %v738_v54, 7  ;;  %s429_s22 = scalar_lea.vmem %s4655_s10, %s3234_s24 }
   0xf   : > { %3795 = vset.pattern.permute.xlu0 %v3807_v2  ;;  %v436_v5 = vld [vmem:[%s3907_s12] sm:$0xff]  ;;  %3524 = vmatmul.mubr.msk.f32.vlgmr.msra.gmra.mxu0 %vm493_vm2, %v435_v4  ;;  %v447_v9 = vld [vmem:[%s3913_s15 + $0x18] sm:$0xff]  ;;  %v449_v10 = vld [vmem:[%s3913_s15 + $0x28] sm:$0xff]  ;;  %v736_v53 = vunpack.c.l.s4 %v3809_v52  ;;  %s3810_s28 = smov 64   ;;  %vm1618_vm4 = vcmask 1041409   ;;  %vm1620_vm5 = vcmask 1042434  }
  0x10   : > { %729 = vrot.lane.b32.xlu0 %v3256_v3, %s3804_s21  ;;  %3528 = vmatprep.mubr.msk.f32.mxu1 %vm493_vm2, %v436_v5  ;;  %v444_v6 = vld [vmem:[%s3913_s15] sm:$0xff]  ;;  %v445_v14 = vld [vmem:[%s3913_s15 + $0x8] sm:$0xff]  ;;  %v446_v16 = vld [vmem:[%s3913_s15 + $0x10] sm:$0xff]  ;;  %vm1622_vm6 = vcmask 1043459   ;;  %vm1624_vm7 = vcmask 1044484   ;;  %vm1626_vm8 = vcmask 1045509  }
  0x11   : > { %3559 = vmatprep.mubr.msk.f32.mxu0 %vm3806_vm1, %v3805_v1  ;;  %454 = vperm.xlu1 %3794, %v444_v6   ;;  %v1021_v15 = vld [vmem:[%s4649_s4] sm:$0xff]  ;;  %v437_v19 = vld [vmem:[%s3907_s12 + $0x8] sm:$0xff]  ;;  %v438_v20 = vld [vmem:[%s3907_s12 + $0x10] sm:$0xff]  ;;  %v737_v56 = vunpack.c.0.s8 %v736_v53  ;;  %vm1628_vm9 = vcmask 1046534   ;;  %vm1630_vm10 = vcmask 1047559  }
  0x12   : > { %3552 = vmatpush3.msra.mxu0 %v1024_v11  ;;  %v448_v17 = vld [vmem:[%s3913_s15 + $0x20] sm:$0xff]  ;;  %v928_v21 = vld [vmem:[%s4650_s5 + $0x18] sm:$0xff]  ;;  %v441_v24 = vld [vmem:[%s3907_s12 + $0x28] sm:$0xff] }
  0x13   : > { %3553 = vmatprep.subr.mxu0 %v3805_v1  ;;  %v439_v22 = vld [vmem:[%s3907_s12 + $0x18] sm:$0xff]  ;;  %v440_v23 = vld [vmem:[%s3907_s12 + $0x20] sm:$0xff]  ;;  %v442_v25 = vld [vmem:[%s3907_s12 + $0x30] sm:$0xff]  ;;  %v4019_v63 = vsub.s32 %v737_v56, %v739_v57 }
  0x14   : > { %3554 = vmatpush3.msra.mxu0 %v1023_v12  ;;  %459 = vperm.xlu0 %3795, %v445_v14   ;;  %v443_v26 = vld [vmem:[%s3907_s12 + $0x38] sm:$0xff]  ;;  %v927_v27 = vld [vmem:[%s4650_s5 + $0x10] sm:$0xff]  ;;  %v926_v28 = vld [vmem:[%s4650_s5 + $0x8] sm:$0xff]  ;;  %s434_s12 = scalar_lea.vmem %s4656_s11, %s3895_s25 }
  0x15   : > { %889 = vrot.lane.b32.xlu1 %v3257_v7, %s3804_s21  ;;  %3555 = vmatprep.subr.mxu0 %v3805_v1  ;;  %v925_v29 = vld [vmem:[%s4650_s5] sm:$0xff]  ;;  %v450_v47 = vld [vmem:[%s3913_s15 + $0x30] sm:$0xff]  ;;  %v451_v48 = vld [vmem:[%s3913_s15 + $0x38] sm:$0xff] }
  0x16   : > { %3556 = vmatpush3.msra.mxu0 %v1022_v13  ;;  %v3253_v30 = vld [vmem:[%s4652_s7] ss:$0 sm:$0xff]  ;;  %v3254_v33 = vld [vmem:[%s4652_s7 + $0x1] ss:$0 sm:$0xff]  ;;  %v3255_v36 = vld [vmem:[%s4652_s7 + $0x2] ss:$0 sm:$0xff] }
  0x17   : > { %3557 = vmatprep.subr.mxu0 %v3805_v1  ;;  %v3270_v49 = vld [vmem:[%s4651_s6 + $0xb8] sm:$0xff]  ;;  %v3269_v50 = vld [vmem:[%s4651_s6 + $0xb0] sm:$0xff]  ;;  %v4035_v13 = vsub.s32 0, %v739_v57 }
  0x18   : > { %3558 = vmatpush3.msra.mxu0 %v1021_v15  ;;  %464 = vperm.xlu0 %3795, %v446_v16  }
  0x19   : > { %906 = vrot.lane.b32.xlu1 %v3258_v8, %s3804_s21 }
  0x1c   : > { %474 = vperm.xlu0 %3795, %v448_v17  }
  0x1d   : > { %469 = vperm.xlu1 %3794, %v447_v9  }
  0x21   : > { %479 = vperm.xlu1 %3794, %v449_v10  }
  0x7e   : > { %v572_v18 = vpop.permute.xlu0 %571 }
  0x7f   : > { %3526 = vmatprep.subr.msk.mxu1 %vm497_vm0, %v572_v18 }
  0x80   : > { %3527 = vmatpush3.msk.msra.mxu1 %vm497_vm0, %v572_v18 }
  0x81   : > { %3529 = vmatmul.mubr.msk.f32.vlgmr.msra.gmra.mxu1 %vm493_vm2, %v437_v19  ;;  %3540 = vmatprep.subr.mxu1 %v3805_v1 }
  0x82   : > { %3531 = vmatprep.mubr.msk.f32.mxu1 %vm493_vm2, %v438_v20  ;;  %3541 = vmatpush3.msra.mxu1 %v928_v21  ;;  %v730_v58 = vpop.permute.xlu0 %729  ;;  %v3268_v20 = vld [vmem:[%s4651_s6 + $0xa8] sm:$0xff] }
  0x83   : > { %3542 = vmatprep.subr.mxu1 %v3805_v1 }
  0x84   : > { %3543 = vmatpush3.msra.mxu1 %v927_v27 }
  0x85   : > { %3532 = vmatmul.mubr.msk.f32.gmra.mxu1 %vm493_vm2, %v439_v22  ;;  %3544 = vmatprep.subr.mxu1 %v3805_v1 }
  0x86   : > { %3534 = vmatprep.mubr.msk.f32.mxu1 %vm493_vm2, %v440_v23  ;;  %3545 = vmatpush3.msra.mxu1 %v926_v28 }
  0x87   : > { %3546 = vmatprep.subr.mxu1 %v3805_v1 }
  0x88   : > { %3547 = vmatpush3.msra.mxu1 %v925_v29 }
  0x89   : > { %3535 = vmatmul.mubr.msk.f32.gmra.mxu1 %vm493_vm2, %v441_v24  ;;  %3562 = vmatprep.subr.mxu1 %v3270_v49  ;;  %v3267_v24 = vld [vmem:[%s4651_s6 + $0xa0] sm:$0xff] }
  0x8a   : > { %3537 = vmatprep.mubr.msk.f32.mxu1 %vm493_vm2, %v442_v25 }
  0x8c   : > { %v4011_v51 = vpop.permute.xlu1 %454 }
  0x8d   : > { %3538 = vmatmul.mubr.msk.f32.gmra.mxu1 %vm493_vm2, %v443_v26 }
  0x8e   : > { %3548 = vmatprep.mubr.msk.f32.mxu1 %vm3806_vm1, %v3805_v1 }
  0x8f   : > { %v4023_v3 = vpop.permute.xlu0 %459 }
  0x90   : > { %v4013_v55 = vpop.permute.xlu1 %889 }
  0x93   : > { %v4028_v8 = vpop.permute.xlu0 %464 }
  0x94   : > { %v4021_v2 = vpop.permute.xlu1 %906 }
  0x97   : > { %v4037_v14 = vpop.permute.xlu0 %474 }
  0x98   : > { %v4026_v5 = vpop.permute.xlu1 %469 }
  0x9c   : > { %v4032_v11 = vpop.permute.xlu1 %479 }
  0xcf   : > { %v567_v31 = vpop.f32.mrf.mxu0 }
  0xd0   : > { %v709_v32 = vadd.f32 %v3253_v30, %v567_v31  ;;  %824 = vrot.lane.b32.xlu1 %v567_v31, %s3808_s30  ;;  %v732_v0 = vadd.f32 %v730_v58, %v567_v31 }
  0xd1   : > { %v3525_v34 = vpop.f32.mrf.mxu0 }
  0xd2   : > { %v710_v35 = vmax.f32 %v709_v32, 0.0  ;;  %v741_v4 = vrot.slane %v732_v0, %v4019_v63  ;;  %v734_v7 = vcombine.high %v732_v0, %v732_v0 }
  0xd4   : > { %v716_v37 = vmul.f32 %v3254_v33, %v710_v35  ;;  %v749_v6 = vcombine.high %v741_v4, %v741_v4  ;;  %v748_v10 = vrot.slane %v734_v7, %v4019_v63  ;;  %v757_v12 = vrot.slane %v741_v4, %v4019_v63 }
  0xd6   : > { %v722_v38 = vadd.f32 %v3255_v36, %v716_v37  ;;  %v771_v9 = vrot.slane %v749_v6, %v4019_v63  ;;  %v750_v17 = vcombine.high %v748_v10, %v748_v10  ;;  %v786_v18 = vrot.slane %v757_v12, %v4035_v13 }
  0xd7   : > { %v779_v19 = vcombine.high %v757_v12, %v757_v12  ;;  %v764_v26 = vrot.slane %v748_v10, %v4019_v63 }
  0xd8   : > { %3560 = vmatmul.mubr.msk.f32.vlgmr.msra.gmra.mxu0 %vm929_vm3, %v722_v38  ;;  %3549 = vmatmul.mubr.msk.f32.vlgmr.msra.gmra.mxu1 %vm929_vm3, %v722_v38  ;;  %v790_v15 = vrot.slane %v771_v9, %v4035_v13  ;;  %v781_v16 = vcombine.high %v771_v9, %v771_v9  ;;  %v778_v27 = vrot.slane %v750_v17, %v4019_v63 }
  0xd9   : > { %3563 = vmatpush3.msra.mxu1 %v3270_v49  ;;  %v794_v30 = vrot.slane %v779_v19, %v4035_v13  ;;  %v802_v36 = vrot.slane %v764_v26, %v4035_v13  ;;  %v780_v38 = vcombine.high %v764_v26, %v764_v26 }
  0xda   : > { %3564 = vmatprep.subr.mxu1 %v3269_v50  ;;  %v798_v23 = vrot.slane %v781_v16, %v4035_v13  ;;  %v806_v37 = vrot.slane %v778_v27, %v4035_v13 }
  0xdb   : > { %3565 = vmatpush3.msra.mxu1 %v3269_v50  ;;  %v810_v52 = vrot.slane %v780_v38, %v4035_v13 }
  0xdc   : > { %3566 = vmatprep.subr.mxu1 %v3268_v20 }
  0xdd   : > { %3567 = vmatpush3.msra.mxu1 %v3268_v20 }
  0xde   : > { %3568 = vmatprep.subr.mxu1 %v3267_v24 }
  0xdf   : > { %3569 = vmatpush3.msra.mxu1 %v3267_v24 }
  0xe0   : > { %3602 = vmatprep.subr.mxu1 %v3805_v1 }
 0x141   : > { %v3530_v39 = vpop.f32.mrf.mxu1 }
 0x142   : > { %845 = vrot.lane.b32.xlu0 %v3530_v39, %s3804_s21  ;;  %v825_v21 = vpop.permute.xlu1 %824  ;;  %v782_v39 = vcombine.high %v778_v27, %v778_v27 }
 0x143   : > { %v665_v40 = vpop.f32.mrf.mxu1  ;;  %v828_v22 = vadd.f32 %v825_v21, %v790_v15  ;;  %v827_v29 = vadd.f32 %v825_v21, %v786_v18  ;;  %v830_v34 = vadd.f32 %v825_v21, %v798_v23  ;;  %v831_v49 = vadd.f32 %v825_v21, %v802_v36 }
 0x144   : > { %843 = vrot.lane.b32.xlu1 %v665_v40, %s3804_s21  ;;  %v832_v50 = vadd.f32 %v825_v21, %v806_v37  ;;  %v814_v53 = vrot.slane %v782_v39, %v4035_v13  ;;  %v833_v10 = vadd.f32 %v825_v21, %v810_v52 }
 0x145   : > { %v3533_v41 = vpop.f32.mrf.mxu1 }
 0x146   : > { %849 = vrot.lane.b32.xlu0 %v3533_v41, %s3804_s21  ;;  %v834_v12 = vadd.f32 %v825_v21, %v814_v53 }
 0x147   : > { %v675_v42 = vpop.f32.mrf.mxu1 }
 0x148   : > { %847 = vrot.lane.b32.xlu1 %v675_v42, %s3804_s21 }
 0x149   : > { %v3536_v43 = vpop.f32.mrf.mxu1 }
 0x14b   : > { %v685_v44 = vpop.f32.mrf.mxu1 }
 0x14c   : > { %851 = vrot.lane.b32.xlu0 %v685_v44, %s3804_s21  ;;  %853 = vrot.lane.b32.xlu1 %v3536_v43, %s3804_s21  ;;  %v829_v43 = vadd.f32 %v825_v21, %v794_v30 }
 0x14d   : > { %v3539_v45 = vpop.f32.mrf.mxu1 }
 0x14f   : > { %v695_v46 = vpop.f32.mrf.mxu1 }
 0x150   : > { %855 = vrot.lane.b32.xlu0 %v695_v46, %s3804_s21  ;;  %857 = vrot.lane.b32.xlu1 %v3539_v45, %s3804_s21 }
 0x154   : > { %484 = vperm.xlu0 %3795, %v450_v47   ;;  %489 = vperm.xlu1 %3794, %v451_v48  }
 0x198   : > { %v4015_v59 = vpop.f32.mrf.mxu0  ;;  %v4017_v60 = vpop.f32.mrf.mxu1 }
 0x19a   : > { %v3550_v61 = vpop.f32.mrf.mxu1  ;;  %v3561_v62 = vpop.f32.mrf.mxu0 }
 0x1b4   : > { %v846_v25 = vpop.permute.xlu0 %845 }
 0x1b5   : > { %v868_v28 = vadd.f32 %v846_v25, %v828_v22 }
 0x1b6   : > { %v844_v31 = vpop.permute.xlu1 %843 }
 0x1b7   : > { %v876_v32 = vmax.f32 %v868_v28, 0.0  ;;  %v867_v33 = vadd.f32 %v844_v31, %v827_v29 }
 0x1b8   : > { %v850_v35 = vpop.permute.xlu0 %849 }
 0x1b9   : > { %v893_v40 = vmul.f32 %v4013_v55, %v876_v32  ;;  %v875_v41 = vmax.f32 %v867_v33, 0.0  ;;  %v870_v42 = vadd.f32 %v850_v35, %v830_v34 }
 0x1ba   : > { %v848_v44 = vpop.permute.xlu1 %847 }
 0x1bb   : > { %v910_v45 = vadd.f32 %v4021_v2, %v893_v40  ;;  %v892_v46 = vmul.f32 %v4013_v55, %v875_v41  ;;  %v878_v47 = vmax.f32 %v870_v42, 0.0  ;;  %v869_v48 = vadd.f32 %v848_v44, %v829_v43 }
 0x1bd   : > { %v909_v54 = vadd.f32 %v4021_v2, %v892_v46  ;;  %v895_v56 = vmul.f32 %v4013_v55, %v878_v47  ;;  %v877_v57 = vmax.f32 %v869_v48, 0.0  ;;  %v918_v58 = vmul.f32 %v910_v45, %v4023_v3  ;;  %v3282_v46 = vld [vmem:[%s4651_s6 + $0xf8] sm:$0xff]  ;;  %v3281_v47 = vld [vmem:[%s4651_s6 + $0xf0] sm:$0xff]  ;;  %v3280_v48 = vld [vmem:[%s4651_s6 + $0xe8] sm:$0xff] }
 0x1be   : > { %v852_v61 = vpop.permute.xlu0 %851  ;;  %v854_v62 = vpop.permute.xlu1 %853  ;;  %3582 = vmatprep.subr.mxu0 %v3282_v46 }
 0x1bf   : > { %v912_v0 = vadd.f32 %v4021_v2, %v895_v56  ;;  %v894_v4 = vmul.f32 %v4013_v55, %v877_v57  ;;  %v871_v6 = vadd.f32 %v852_v61, %v831_v49  ;;  %v872_v7 = vadd.f32 %v854_v62, %v832_v50  ;;  %1166 = vrot.lane.b32.xlu1 %v918_v58, %s3808_s30  ;;  %v3279_v49 = vld [vmem:[%s4651_s6 + $0xe0] sm:$0xff]  ;;  %v3266_v50 = vld [vmem:[%s4652_s7 + $0xc] ss:$0 sm:$0xff] }
 0x1c0   : > { %v917_v9 = vmul.f32 %v909_v54, %v4011_v51  ;;  %3583 = vmatpush3.msra.mxu0 %v3282_v46  ;;  %v1100_v52 = vadd.f32 %v3266_v50, %v4015_v59 }
 0x1c1   : > { %v911_v15 = vadd.f32 %v4021_v2, %v894_v4  ;;  %v879_v16 = vmax.f32 %v871_v6, 0.0  ;;  %v880_v17 = vmax.f32 %v872_v7, 0.0  ;;  %v920_v18 = vmul.f32 %v912_v0, %v4026_v5  ;;  %3584 = vmatprep.subr.mxu0 %v3281_v47 }
 0x1c2   : > { %1164 = vrot.lane.b32.xlu0 %v917_v9, %s3808_s30  ;;  %v856_v19 = vpop.permute.xlu0 %855  ;;  %v858_v20 = vpop.permute.xlu1 %857  ;;  %3585 = vmatpush3.msra.mxu0 %v3281_v47  ;;  %v1109_v53 = vrot.slane %v1100_v52, %v4019_v63  ;;  %v1102_v54 = vcombine.high %v1100_v52, %v1100_v52 }
 0x1c3   : > { %v896_v22 = vmul.f32 %v4013_v55, %v879_v16  ;;  %v897_v23 = vmul.f32 %v4013_v55, %v880_v17  ;;  %v873_v24 = vadd.f32 %v856_v19, %v833_v10  ;;  %v874_v25 = vadd.f32 %v858_v20, %v834_v12  ;;  %1170 = vrot.lane.b32.xlu1 %v920_v18, %s3808_s30 }
 0x1c4   : > { %v919_v21 = vmul.f32 %v911_v15, %v4028_v8  ;;  %3586 = vmatprep.subr.mxu0 %v3280_v48  ;;  %v1117_v56 = vcombine.high %v1109_v53, %v1109_v53  ;;  %v1116_v57 = vrot.slane %v1102_v54, %v4019_v63  ;;  %v1125_v61 = vrot.slane %v1109_v53, %v4019_v63 }
 0x1c5   : > { %v913_v26 = vadd.f32 %v4021_v2, %v896_v22  ;;  %v914_v27 = vadd.f32 %v4021_v2, %v897_v23  ;;  %v881_v28 = vmax.f32 %v873_v24, 0.0  ;;  %v882_v29 = vmax.f32 %v874_v25, 0.0  ;;  %3587 = vmatpush3.msra.mxu0 %v3280_v48 }
 0x1c6   : > { %1168 = vrot.lane.b32.xlu0 %v919_v21, %s3808_s30  ;;  %3588 = vmatprep.subr.mxu0 %v3279_v49  ;;  %v1139_v58 = vrot.slane %v1117_v56, %v4019_v63  ;;  %v1118_v6 = vcombine.high %v1116_v57, %v1116_v57  ;;  %v1304_v7 = vrot.slane %v1125_v61, %v4035_v13 }
 0x1c7   : > { %v921_v30 = vmul.f32 %v913_v26, %v4037_v14  ;;  %v922_v31 = vmul.f32 %v914_v27, %v4032_v11  ;;  %v898_v32 = vmul.f32 %v4013_v55, %v881_v28  ;;  %v899_v33 = vmul.f32 %v4013_v55, %v882_v29  ;;  %3589 = vmatpush3.msra.mxu0 %v3279_v49 }
 0x1c8   : > { %3613 = vmatprep.subr.mxu0 %v3805_v1  ;;  %v1308_v0 = vrot.slane %v1139_v58, %v4035_v13  ;;  %v1149_v4 = vcombine.high %v1139_v58, %v1139_v58  ;;  %v1147_v9 = vcombine.high %v1125_v61, %v1125_v61  ;;  %v1146_v18 = vrot.slane %v1118_v6, %v4019_v63 }
 0x1c9   : > { %1174 = vrot.lane.b32.xlu1 %v922_v31, %s3808_s30  ;;  %v915_v34 = vadd.f32 %v4021_v2, %v898_v32  ;;  %v916_v35 = vadd.f32 %v4021_v2, %v899_v33  ;;  %v1132_v22 = vrot.slane %v1116_v57, %v4019_v63 }
 0x1ca   : > { %1172 = vrot.lane.b32.xlu0 %v921_v30, %s3808_s30  ;;  %v1316_v17 = vrot.slane %v1149_v4, %v4035_v13  ;;  %v1312_v20 = vrot.slane %v1147_v9, %v4035_v13  ;;  %v1324_v29 = vrot.slane %v1146_v18, %v4035_v13  ;;  %v1150_v47 = vcombine.high %v1146_v18, %v1146_v18  ;;  %v4174_v9 = vld [vmem:[%s4651_s6 + $0x18] sm:$0xff] }
 0x1cb   : > { %v1320_v31 = vrot.slane %v1132_v22, %v4035_v13  ;;  %v1148_v49 = vcombine.high %v1132_v22, %v1132_v22 }
 0x1cc   : > { %v1332_v53 = vrot.slane %v1150_v47, %v4035_v13 }
 0x1cd   : > { %v1328_v54 = vrot.slane %v1148_v49, %v4035_v13 }
 0x1cf   : > { %v4084_v36 = vpop.permute.xlu0 %484  ;;  %v4086_v37 = vpop.permute.xlu1 %489 }
 0x1d0   : > { %v923_v38 = vmul.f32 %v915_v34, %v4084_v36  ;;  %v924_v39 = vmul.f32 %v916_v35, %v4086_v37 }
 0x1d2   : > { %1176 = vrot.lane.b32.xlu0 %v923_v38, %s3808_s30  ;;  %1178 = vrot.lane.b32.xlu1 %v924_v39, %s3808_s30 }
 0x1d6   : > { %1606 = vrot.lane.b32.xlu1 %v4015_v59, %s3810_s28  ;;  %1342 = vrot.lane.b32.xlu0 %v4015_v59, %s3808_s30 }
 0x231   : > { %v4096_v55 = vpop.permute.xlu1 %1166 }
 0x234   : > { %v4098_v2 = vpop.permute.xlu0 %1164 }
 0x235   : > { %3570 = vmatprep.mubr.msk.f32.mxu1 %vm929_vm3, %v4098_v2  ;;  %v4104_v40 = vpop.permute.xlu1 %1170 }
 0x236   : > { %3571 = vmatmul.mubr.msk.f32.vlgmr.msra.gmra.mxu1 %vm929_vm3, %v4096_v55 }
 0x237   : > { %3603 = vmatpush3.msra.mxu1 %v4174_v9 }
 0x238   : > { %v4106_v41 = vpop.permute.xlu0 %1168  ;;  %3604 = vmatprep.subr.mxu1 %v3805_v1 }
 0x239   : > { %3573 = vmatprep.mubr.msk.f32.mxu1 %vm929_vm3, %v4106_v41 }
 0x23a   : > { %3574 = vmatmul.mubr.msk.f32.gmra.mxu1 %vm929_vm3, %v4104_v40 }
 0x23b   : > { %v4112_v42 = vpop.permute.xlu1 %1174 }
 0x23c   : > { %v4114_v43 = vpop.permute.xlu0 %1172 }
 0x23d   : > { %3576 = vmatprep.mubr.msk.f32.mxu1 %vm929_vm3, %v4114_v43 }
 0x23e   : > { %3577 = vmatmul.mubr.msk.f32.gmra.mxu1 %vm929_vm3, %v4112_v42 }
 0x244   : > { %v4120_v44 = vpop.permute.xlu0 %1176  ;;  %v4122_v45 = vpop.permute.xlu1 %1178 }
 0x245   : > { %3579 = vmatprep.mubr.msk.f32.mxu1 %vm929_vm3, %v4120_v44 }
 0x246   : > { %3580 = vmatmul.mubr.msk.f32.gmra.mxu1 %vm929_vm3, %v4122_v45 }
 0x247   : > { %3610 = vmatprep.mubr.msk.f32.mxu1 %vm3806_vm1, %v3805_v1 }
 0x248   : > { %v1343_v62 = vpop.permute.xlu0 %1342 }
 0x249   : > { %v1346_v59 = vadd.f32 %v1343_v62, %v1308_v0  ;;  %v1345_v12 = vadd.f32 %v1343_v62, %v1304_v7  ;;  %v1348_v24 = vadd.f32 %v1343_v62, %v1316_v17  ;;  %v1347_v21 = vadd.f32 %v1343_v62, %v1312_v20  ;;  %v3283_v17 = vld [vmem:[%s4652_s7 + $0xd] ss:$0 sm:$0xff]  ;;  %v4226_v20 = vld [vmem:[%s4652_s7 + $0xe] ss:$0 sm:$0xff] }
 0x24a   : > { %v1350_v33 = vadd.f32 %v1343_v62, %v1324_v29  ;;  %v1349_v35 = vadd.f32 %v1343_v62, %v1320_v31  ;;  %v1352_v57 = vadd.f32 %v1343_v62, %v1332_v53  ;;  %v1351_v58 = vadd.f32 %v1343_v62, %v1328_v54  ;;  %v4179_v62 = vld [vmem:[%s4651_s6 + $0x10] sm:$0xff] }
 0x24b   : > { %3605 = vmatpush3.msra.mxu1 %v4179_v62 }
 0x24c   : > { %3606 = vmatprep.subr.mxu1 %v3805_v1 }
 0x2f6   : > { %v3572_v10 = vpop.f32.mrf.mxu1 }
 0x2f7   : > { %v1354_v15 = vadd.f32 %v3572_v10, %v1346_v59  ;;  %v4186_v10 = vld [vmem:[%s4651_s6 + $0x8] sm:$0xff]  ;;  %v4193_v59 = vld [vmem:[%s4651_s6] sm:$0xff] }
 0x2f8   : > { %v1262_v16 = vpop.f32.mrf.mxu1  ;;  %3607 = vmatpush3.msra.mxu1 %v4186_v10 }
 0x2f9   : > { %v1353_v19 = vadd.f32 %v1345_v12, %v1262_v16  ;;  %v1362_v26 = vmax.f32 %v1354_v15, 0.0  ;;  %v4198_v12 = vld [vmem:[%s4651_s6 + $0x38] sm:$0xff]  ;;  %v4203_v15 = vld [vmem:[%s4651_s6 + $0x30] sm:$0xff]  ;;  %3608 = vmatprep.subr.mxu1 %v3805_v1  ;;  %v4212_v16 = vld [vmem:[%s4651_s6 + $0x28] sm:$0xff] }
 0x2fa   : > { %v3575_v23 = vpop.f32.mrf.mxu1  ;;  %3609 = vmatpush3.msra.mxu1 %v4193_v59 }
 0x2fb   : > { %v1361_v25 = vmax.f32 %v1353_v19, 0.0  ;;  %v1356_v27 = vadd.f32 %v3575_v23, %v1348_v24  ;;  %3624 = vmatprep.subr.mxu1 %v3805_v1 }
 0x2fc   : > { %v1272_v28 = vpop.f32.mrf.mxu1 }
 0x2fd   : > { %v1355_v30 = vadd.f32 %v1347_v21, %v1272_v28  ;;  %3590 = vmatprep.mubr.msk.f32.mxu0 %vm929_vm3, %v1361_v25  ;;  %v1364_v38 = vmax.f32 %v1356_v27, 0.0  ;;  %v4231_v25 = vld [vmem:[%s4652_s7 + $0xf] ss:$0 sm:$0xff] }
 0x2fe   : > { %v3578_v32 = vpop.f32.mrf.mxu1  ;;  %3591 = vmatmul.mubr.msk.f32.vlgmr.msra.gmra.mxu0 %vm929_vm3, %v1362_v26 }
 0x2ff   : > { %v1363_v34 = vmax.f32 %v1355_v30, 0.0  ;;  %v1358_v39 = vadd.f32 %v3578_v32, %v1350_v33  ;;  %3614 = vmatpush3.msra.mxu0 %v4198_v12 }
 0x300   : > { %v1282_v46 = vpop.f32.mrf.mxu1  ;;  %3615 = vmatprep.subr.mxu0 %v3805_v1 }
 0x301   : > { %v1357_v48 = vadd.f32 %v1349_v35, %v1282_v46  ;;  %3593 = vmatprep.mubr.msk.f32.mxu0 %vm929_vm3, %v1363_v34  ;;  %v1366_v52 = vmax.f32 %v1358_v39, 0.0  ;;  %3616 = vmatpush3.msra.mxu0 %v4203_v15 }
 0x302   : > { %3594 = vmatmul.mubr.msk.f32.gmra.mxu0 %vm929_vm3, %v1364_v38  ;;  %3617 = vmatprep.subr.mxu0 %v3805_v1 }
 0x303   : > { %v1365_v50 = vmax.f32 %v1357_v48, 0.0  ;;  %3618 = vmatpush3.msra.mxu0 %v4212_v16 }
 0x304   : > { %3619 = vmatprep.subr.mxu0 %v3805_v1 }
 0x305   : > { %3596 = vmatprep.mubr.msk.f32.mxu0 %vm929_vm3, %v1365_v50 }
 0x306   : > { %3597 = vmatmul.mubr.msk.f32.gmra.mxu0 %vm929_vm3, %v1366_v52  ;;  %v3581_v56 = vpop.f32.mrf.mxu1 }
 0x307   : > { %v1360_v61 = vadd.f32 %v3581_v56, %v1352_v57 }
 0x308   : > { %v1292_v0 = vpop.f32.mrf.mxu1 }
 0x309   : > { %v1359_v4 = vadd.f32 %v1351_v58, %v1292_v0  ;;  %v1368_v7 = vmax.f32 %v1360_v61, 0.0 }
 0x30b   : > { %v1367_v6 = vmax.f32 %v1359_v4, 0.0 }
 0x30d   : > { %3599 = vmatprep.mubr.msk.f32.mxu0 %vm929_vm3, %v1367_v6 }
 0x30e   : > { %3600 = vmatmul.mubr.msk.f32.gmra.mxu0 %vm929_vm3, %v1368_v7 }
 0x30f   : > { %3621 = vmatprep.mubr.msk.f32.mxu0 %vm3806_vm1, %v3805_v1 }
 0x3be   : > { %v3592_v18 = vpop.f32.mrf.mxu0 }
 0x3bf   : > { %v1475_v19 = vadd.f32 %v3592_v18, %v3283_v17 }
 0x3c0   : > { %v1469_v22 = vpop.f32.mrf.mxu0 }
 0x3c1   : > { %v1509_v23 = vmax.f32 %v1475_v19, 0.0  ;;  %v1470_v24 = vadd.f32 %v3283_v17, %v1469_v22 }
 0x3c2   : > { %v3595_v21 = vpop.f32.mrf.mxu0 }
 0x3c3   : > { %v1522_v26 = vmul.f32 %v4226_v20, %v1509_v23  ;;  %v1508_v27 = vmax.f32 %v1470_v24, 0.0  ;;  %v1485_v28 = vadd.f32 %v3595_v21, %v3283_v17 }
 0x3c4   : > { %v1479_v29 = vpop.f32.mrf.mxu0 }
 0x3c5   : > { %v1535_v30 = vadd.f32 %v4231_v25, %v1522_v26  ;;  %v1521_v31 = vmul.f32 %v4226_v20, %v1508_v27  ;;  %v1511_v32 = vmax.f32 %v1485_v28, 0.0  ;;  %v1480_v33 = vadd.f32 %v3283_v17, %v1479_v29 }
 0x3c6   : > { %v3598_v34 = vpop.f32.mrf.mxu0 }
 0x3c7   : > { %v4237_v35 = vmul.f32 %v1535_v30, %v4023_v3  ;;  %v1534_v38 = vadd.f32 %v4231_v25, %v1521_v31  ;;  %v1524_v39 = vmul.f32 %v4226_v20, %v1511_v32  ;;  %v1510_v46 = vmax.f32 %v1480_v33, 0.0 }
 0x3c8   : > { %v1495_v47 = vadd.f32 %v3598_v34, %v3283_v17  ;;  %v1489_v48 = vpop.f32.mrf.mxu0 }
 0x3c9   : > { %v1557_v49 = vsel %vm929_vm3, %v4237_v35, 0.0  ;;  %v4244_v50 = vmul.f32 %v1534_v38, %v4011_v51  ;;  %v1537_v52 = vadd.f32 %v4231_v25, %v1524_v39  ;;  %v1523_v53 = vmul.f32 %v4226_v20, %v1510_v46 }
 0x3ca   : > { %v1558_v54 = vrot.slane %v1557_v49, 4  ;;  %v1513_v56 = vmax.f32 %v1495_v47, 0.0  ;;  %v1490_v57 = vadd.f32 %v3283_v17, %v1489_v48 }
 0x3cb   : > { %v1550_v58 = vsel %vm929_vm3, %v4244_v50, 0.0  ;;  %v4251_v61 = vmul.f32 %v1537_v52, %v4026_v5  ;;  %v1536_v0 = vadd.f32 %v4231_v25, %v1523_v53 }
 0x3cc   : > { %v1559_v4 = vadd.f32 %v1558_v54, %v1557_v49  ;;  %v1551_v6 = vrot.slane %v1550_v58, 4  ;;  %v1526_v7 = vmul.f32 %v4226_v20, %v1513_v56  ;;  %v1512_v18 = vmax.f32 %v1490_v57, 0.0 }
 0x3cd   : > { %v1571_v19 = vsel %vm929_vm3, %v4251_v61, 0.0  ;;  %v4258_v22 = vmul.f32 %v1536_v0, %v4028_v8 }
 0x3ce   : > { %v1552_v23 = vadd.f32 %v1551_v6, %v1550_v58  ;;  %v1572_v24 = vrot.slane %v1571_v19, 4  ;;  %v1539_v21 = vadd.f32 %v4231_v25, %v1526_v7  ;;  %v3601_v26 = vpop.f32.mrf.mxu0  ;;  %v1525_v28 = vmul.f32 %v4226_v20, %v1512_v18 }
 0x3cf   : > { %v1564_v27 = vsel %vm929_vm3, %v4258_v22, 0.0  ;;  %v1505_v29 = vadd.f32 %v3601_v26, %v3283_v17  ;;  %v1560_v30 = vrot.slane %v1559_v4, 2 }
 0x3d0   : > { %v1553_v31 = vrot.slane %v1552_v23, 2  ;;  %v1573_v32 = vadd.f32 %v1572_v24, %v1571_v19  ;;  %v1565_v33 = vrot.slane %v1564_v27, 4  ;;  %v1499_v34 = vpop.f32.mrf.mxu0  ;;  %v4265_v38 = vmul.f32 %v1539_v21, %v4032_v11 }
 0x3d1   : > { %v1538_v39 = vadd.f32 %v4231_v25, %v1525_v28  ;;  %v1515_v46 = vmax.f32 %v1505_v29, 0.0  ;;  %v1500_v47 = vadd.f32 %v3283_v17, %v1499_v34  ;;  %v1561_v57 = vadd.f32 %v1560_v30, %v1559_v4 }
 0x3d2   : > { %v1554_v48 = vadd.f32 %v1553_v31, %v1552_v23  ;;  %v1566_v49 = vadd.f32 %v1565_v33, %v1564_v27  ;;  %v1585_v52 = vsel %vm929_vm3, %v4265_v38, 0.0  ;;  %v1574_v58 = vrot.slane %v1573_v32, 2 }
 0x3d3   : > { %v4271_v53 = vmul.f32 %v1538_v39, %v4037_v14  ;;  %v1528_v54 = vmul.f32 %v4226_v20, %v1515_v46  ;;  %v1514_v56 = vmax.f32 %v1500_v47, 0.0  ;;  %v1586_v6 = vrot.slane %v1585_v52, 4 }
 0x3d4   : > { %v1567_v0 = vrot.slane %v1566_v49, 2  ;;  %v1555_v24 = vrot.slane %v1554_v48, 1  ;;  %v1562_v4 = vrot.slane %v1561_v57, 1  ;;  %v1575_v30 = vadd.f32 %v1574_v58, %v1573_v32 }
 0x3d5   : > { %v1578_v7 = vsel %vm929_vm3, %v4271_v53, 0.0  ;;  %v1541_v17 = vadd.f32 %v4231_v25, %v1528_v54  ;;  %v1527_v18 = vmul.f32 %v4226_v20, %v1514_v56  ;;  %v1587_v21 = vadd.f32 %v1586_v6, %v1585_v52 }
 0x3d6   : > { %v1568_v19 = vadd.f32 %v1567_v0, %v1566_v49  ;;  %v1579_v23 = vrot.slane %v1578_v7, 4  ;;  %v1556_v46 = vadd.f32 %v1555_v24, %v1554_v48  ;;  %v1563_v56 = vadd.f32 %v1562_v4, %v1561_v57 }
 0x3d7   : > { %v4279_v26 = vmul.f32 %v1541_v17, %v4086_v37  ;;  %v1540_v27 = vadd.f32 %v4231_v25, %v1527_v18  ;;  %v1588_v31 = vrot.slane %v1587_v21, 2  ;;  %v1576_v32 = vrot.slane %v1575_v30, 1 }
 0x3d8   : > { %v1569_v28 = vrot.slane %v1568_v19, 1  ;;  %v1580_v29 = vadd.f32 %v1579_v23, %v1578_v7  ;;  %v1619_v17 = vsel %vm1618_vm4, %v1563_v56, %v1556_v46 }
 0x3d9   : > { %v1599_v33 = vsel %vm929_vm3, %v4279_v26, 0.0  ;;  %v4285_v34 = vmul.f32 %v1540_v27, %v4084_v36  ;;  %v1589_v58 = vadd.f32 %v1588_v31, %v1587_v21  ;;  %v1577_v27 = vadd.f32 %v1576_v32, %v1575_v30 }
 0x3da   : > { %v1581_v20 = vrot.slane %v1580_v29, 2  ;;  %v1600_v39 = vrot.slane %v1599_v33, 4  ;;  %v1570_v49 = vadd.f32 %v1569_v28, %v1568_v19 }
 0x3db   : > { %v1592_v47 = vsel %vm929_vm3, %v4285_v34, 0.0  ;;  %v1590_v19 = vrot.slane %v1589_v58, 1 }
 0x3dc   : > { %v1582_v25 = vadd.f32 %v1581_v20, %v1580_v29  ;;  %v1601_v52 = vadd.f32 %v1600_v39, %v1599_v33  ;;  %v1593_v54 = vrot.slane %v1592_v47, 4  ;;  %v1621_v48 = vsel %vm1620_vm5, %v1570_v49, %v1619_v17  ;;  %v3308_v49 = vld [vmem:[%s4651_s6 + $0xd8] sm:$0xff]  ;;  %v3306_v17 = vld [vmem:[%s4651_s6 + $0xc8] sm:$0xff] }
 0x3dd   : > { %v1623_v57 = vsel %vm1622_vm6, %v1577_v27, %v1621_v48  ;;  %v1591_v31 = vadd.f32 %v1590_v19, %v1589_v58  ;;  %v3305_v48 = vld [vmem:[%s4651_s6 + $0xc0] sm:$0xff]  ;;  %v3318_v27 = vld [vmem:[%s4651_s6 + $0x108] sm:$0xff] }
 0x3de   : > { %v1583_v0 = vrot.slane %v1582_v25, 1  ;;  %v1602_v6 = vrot.slane %v1601_v52, 2  ;;  %v1594_v7 = vadd.f32 %v1593_v54, %v1592_v47  ;;  %v4302_v47 = vld [vmem:[%s4651_s6 + $0x20] sm:$0xff] }
 0x3df   : > { %3620 = vmatpush3.msra.mxu0 %v4302_v47  ;;  %v3317_v19 = vld [vmem:[%s4651_s6 + $0x100] sm:$0xff] }
 0x3e0   : > { %v1584_v18 = vadd.f32 %v1583_v0, %v1582_v25  ;;  %v1603_v23 = vadd.f32 %v1602_v6, %v1601_v52  ;;  %v1595_v24 = vrot.slane %v1594_v7, 2  ;;  %3635 = vmatprep.subr.mxu0 %v3308_v49  ;;  %v3260_v25 = vld [vmem:[%s4652_s7 + $0x6] ss:$0 sm:$0xff]  ;;  %v1607_v52 = vpop.permute.xlu1 %1606 }
 0x3e1   : > { %v4312_v54 = vadd.f32 %v3260_v25, %v4017_v60 }
 0x3e2   : > { %v1596_v28 = vadd.f32 %v1595_v24, %v1594_v7  ;;  %v1604_v29 = vrot.slane %v1603_v23, 1  ;;  %v1625_v21 = vsel %vm1624_vm7, %v1584_v18, %v1623_v57  ;;  %v3307_v7 = vld [vmem:[%s4651_s6 + $0xd0] sm:$0xff] }
 0x3e3   : > { %v1627_v39 = vsel %vm1626_vm8, %v1591_v31, %v1625_v21  ;;  %v1609_v56 = vadd.f32 %v1607_v52, %v4312_v54  ;;  %v3319_v24 = vld [vmem:[%s4651_s6 + $0x110] sm:$0xff] }
 0x3e4   : > { %v1597_v4 = vrot.slane %v1596_v28, 1  ;;  %v1605_v20 = vadd.f32 %v1604_v29, %v1603_v23  ;;  %v3320_v23 = vld [vmem:[%s4651_s6 + $0x118] sm:$0xff]  ;;  %v3304_v57 = vld [vmem:[%s4652_s7 + $0x10] ss:$0 sm:$0xff] }
 0x3e6   : > { %v1598_v33 = vadd.f32 %v1597_v4, %v1596_v28 }
 0x3e8   : > { %v1629_v46 = vsel %vm1628_vm9, %v1598_v33, %v1627_v39 }
 0x3e9   : > { %v1631_v30 = vsel %vm1630_vm10, %v1605_v20, %v1629_v46 }
 0x3ea   : > { %3611 = vmatmul.mubr.msk.f32.vlgmr.msra.gmra.mxu1 %vm929_vm3, %v1631_v30 }
 0x3eb   : > { %3632 = vmatprep.mubr.msk.f32.mxu1 %vm3806_vm1, %v3805_v1 }
 0x4aa   : > { %v1700_v32 = vpop.f32.mrf.mxu1 }
 0x4ab   : > { %v1704_v58 = vadd.f32 %v1700_v32, %v1609_v56 }
 0x4ac   : > { %v3612_v0 = vpop.f32.mrf.mxu1 }
 0x4ad   : > { %v1705_v6 = vmax.f32 %v1704_v58, 0.0 }
 0x4af   : > { %3622 = vmatmul.mubr.msk.f32.vlgmr.msra.gmra.mxu0 %vm929_vm3, %v1705_v6 }
 0x4b0   : > { %3636 = vmatpush3.msra.mxu0 %v3308_v49  ;;  %3643 = vmatprep.mubr.msk.f32.mxu0 %vm929_vm3, %v4244_v50 }
 0x4b1   : > { %3637 = vmatprep.subr.mxu0 %v3307_v7 }
 0x4b2   : > { %3638 = vmatpush3.msra.mxu0 %v3307_v7 }
 0x4b3   : > { %3639 = vmatprep.subr.mxu0 %v3306_v17 }
 0x4b4   : > { %3640 = vmatpush3.msra.mxu0 %v3306_v17 }
 0x4b5   : > { %3641 = vmatprep.subr.mxu0 %v3305_v48 }
 0x4b6   : > { %3642 = vmatpush3.msra.mxu0 %v3305_v48 }
 0x4b7   : > { %3644 = vmatmul.mubr.msk.f32.vlgmr.msra.gmra.mxu0 %vm929_vm3, %v4237_v35  ;;  %3675 = vmatprep.subr.mxu0 %v3805_v1  ;;  %v4370_v35 = vld [vmem:[%s4652_s7 + $0x7] ss:$0 sm:$0xff] }
 0x4b8   : > { %3646 = vmatprep.mubr.msk.f32.mxu0 %vm929_vm3, %v4258_v22  ;;  %3676 = vmatpush3.msra.mxu0 %v4174_v9  ;;  %v3302_v9 = vld [vmem:[%s4649_s4 + $0x38] sm:$0xff]  ;;  %v4376_v22 = vld [vmem:[%s4652_s7 + $0x8] ss:$0 sm:$0xff] }
 0x4b9   : > { %3677 = vmatprep.subr.mxu0 %v3805_v1  ;;  %3625 = vmatpush3.msra.mxu1 %v3302_v9 }
 0x4ba   : > { %3678 = vmatpush3.msra.mxu0 %v4179_v62  ;;  %3626 = vmatprep.subr.mxu1 %v3805_v1  ;;  %v3301_v62 = vld [vmem:[%s4649_s4 + $0x30] sm:$0xff] }
 0x4bb   : > { %3647 = vmatmul.mubr.msk.f32.gmra.mxu0 %vm929_vm3, %v4251_v61  ;;  %3679 = vmatprep.subr.mxu0 %v3805_v1 }
 0x4bc   : > { %3649 = vmatprep.mubr.msk.f32.mxu0 %vm929_vm3, %v4271_v53  ;;  %3680 = vmatpush3.msra.mxu0 %v4186_v10  ;;  %v3300_v10 = vld [vmem:[%s4649_s4 + $0x28] sm:$0xff] }
 0x4bd   : > { %3681 = vmatprep.subr.mxu0 %v3805_v1  ;;  %3627 = vmatpush3.msra.mxu1 %v3301_v62 }
 0x4be   : > { %3682 = vmatpush3.msra.mxu0 %v4193_v59  ;;  %3628 = vmatprep.subr.mxu1 %v3805_v1  ;;  %v3299_v59 = vld [vmem:[%s4649_s4 + $0x20] sm:$0xff] }
 0x4bf   : > { %3650 = vmatmul.mubr.msk.f32.gmra.mxu0 %vm929_vm3, %v4265_v38  ;;  %3697 = vmatprep.subr.mxu0 %v3805_v1 }
 0x4c0   : > { %3652 = vmatprep.mubr.msk.f32.mxu0 %vm929_vm3, %v4285_v34  ;;  %3629 = vmatpush3.msra.mxu1 %v3300_v10 }
 0x4c1   : > { %3630 = vmatprep.subr.mxu1 %v3805_v1 }
 0x4c2   : > { %3631 = vmatpush3.msra.mxu1 %v3299_v59 }
 0x4c3   : > { %3653 = vmatmul.mubr.msk.f32.gmra.mxu0 %vm929_vm3, %v4279_v26  ;;  %v4381_v26 = vld [vmem:[%s4652_s7 + $0x9] ss:$0 sm:$0xff]  ;;  %3655 = vmatprep.subr.mxu1 %v3320_v23 }
 0x4c4   : > { %3683 = vmatprep.mubr.msk.f32.mxu0 %vm3806_vm1, %v3805_v1 }
 0x56f   : > { %v1779_v50 = vpop.f32.mrf.mxu0 }
 0x570   : > { %v1780_v61 = vadd.f32 %v4370_v35, %v1779_v50 }
 0x571   : > { %v3623_v38 = vpop.f32.mrf.mxu0 }
 0x572   : > { %v1783_v53 = vmax.f32 %v1780_v61, 0.0 }
 0x574   : > { %v1788_v34 = vmul.f32 %v4376_v22, %v1783_v53 }
 0x576   : > { %v1793_v18 = vadd.f32 %v4381_v26, %v1788_v34 }
 0x577   : > { %v3645_v21 = vpop.f32.mrf.mxu0 }
 0x578   : > { %3633 = vmatmul.mubr.msk.f32.vlgmr.msra.gmra.mxu1 %vm929_vm3, %v1793_v18 }
 0x579   : > { %3656 = vmatpush3.msra.mxu1 %v3320_v23  ;;  %v2023_v33 = vpop.f32.mrf.mxu0 }
 0x57a   : > { %3657 = vmatprep.subr.mxu1 %v3319_v24 }
 0x57b   : > { %3658 = vmatpush3.msra.mxu1 %v3319_v24  ;;  %v3648_v46 = vpop.f32.mrf.mxu0 }
 0x57c   : > { %3659 = vmatprep.subr.mxu1 %v3318_v27 }
 0x57d   : > { %3660 = vmatpush3.msra.mxu1 %v3318_v27  ;;  %v2033_v52 = vpop.f32.mrf.mxu0 }
 0x57e   : > { %3661 = vmatprep.subr.mxu1 %v3317_v19 }
 0x57f   : > { %3662 = vmatpush3.msra.mxu1 %v3317_v19  ;;  %v3651_v0 = vpop.f32.mrf.mxu0 }
 0x580   : > { %3686 = vmatprep.subr.mxu1 %v3805_v1 }
 0x581   : > { %v2043_v53 = vpop.f32.mrf.mxu0 }
 0x638   : > { %v1868_v28 = vpop.f32.mrf.mxu1 }
 0x639   : > { %2367 = vrot.lane.b32.xlu1 %v1868_v28, %s3810_s28  ;;  %2103 = vrot.lane.b32.xlu0 %v1868_v28, %s3808_s30  ;;  %v1877_v4 = vadd.f32 %v3304_v57, %v1868_v28 }
 0x63a   : > { %v3634_v29 = vpop.f32.mrf.mxu1 }
 0x63b   : > { %v1886_v31 = vrot.slane %v1877_v4, %v4019_v63  ;;  %v1879_v20 = vcombine.high %v1877_v4, %v1877_v4  ;;  %v3654_v4 = vpop.f32.mrf.mxu0 }
 0x63d   : > { %2542 = vrot.lane.b32.xlu0 %v4017_v60, %s3808_s30  ;;  %v1894_v39 = vcombine.high %v1886_v31, %v1886_v31  ;;  %v1902_v30 = vrot.slane %v1886_v31, %v4019_v63  ;;  %v1893_v49 = vrot.slane %v1879_v20, %v4019_v63 }
 0x63f   : > { %v1916_v25 = vrot.slane %v1894_v39, %v4019_v63  ;;  %v1924_v60 = vcombine.high %v1902_v30, %v1902_v30  ;;  %v1895_v56 = vcombine.high %v1893_v49, %v1893_v49  ;;  %v1909_v32 = vrot.slane %v1893_v49, %v4019_v63 }
 0x640   : > { %v2065_v6 = vrot.slane %v1902_v30, %v4035_v13 }
 0x641   : > { %v1926_v58 = vcombine.high %v1916_v25, %v1916_v25  ;;  %v2069_v7 = vrot.slane %v1916_v25, %v4035_v13  ;;  %v2073_v17 = vrot.slane %v1924_v60, %v4035_v13  ;;  %v1923_v48 = vrot.slane %v1895_v56, %v4019_v63 }
 0x642   : > { %v1925_v9 = vcombine.high %v1909_v32, %v1909_v32  ;;  %v2081_v59 = vrot.slane %v1909_v32, %v4035_v13 }
 0x643   : > { %v2077_v10 = vrot.slane %v1926_v58, %v4035_v13  ;;  %v1927_v19 = vcombine.high %v1923_v48, %v1923_v48  ;;  %v2085_v28 = vrot.slane %v1923_v48, %v4035_v13  ;;  %v3331_v48 = vld [vmem:[%s4652_s7 + $0x13] ss:$0 sm:$0xff] }
 0x644   : > { %v2089_v57 = vrot.slane %v1925_v9, %v4035_v13 }
 0x6ab   : > { %v2104_v62 = vpop.permute.xlu0 %2103 }
 0x6ac   : > { %v2106_v50 = vadd.f32 %v2104_v62, %v2065_v6  ;;  %v2107_v61 = vadd.f32 %v2104_v62, %v2069_v7  ;;  %v2108_v38 = vadd.f32 %v2104_v62, %v2073_v17  ;;  %v2109_v34 = vadd.f32 %v2104_v62, %v2077_v10 }
 0x6ad   : > { %v2110_v27 = vadd.f32 %v2104_v62, %v2081_v59  ;;  %v2111_v20 = vadd.f32 %v2104_v62, %v2085_v28  ;;  %v2112_v49 = vadd.f32 %v2104_v62, %v2089_v57 }
 0x6ae   : > { %v2114_v18 = vadd.f32 %v2106_v50, %v2023_v33  ;;  %v2115_v23 = vadd.f32 %v3645_v21, %v2107_v61  ;;  %v2116_v24 = vadd.f32 %v2108_v38, %v2033_v52  ;;  %v2117_v31 = vadd.f32 %v3648_v46, %v2109_v34  ;;  %v2053_v33 = vpop.f32.mrf.mxu0 }
 0x6af   : > { %v2118_v30 = vadd.f32 %v2110_v27, %v2043_v53  ;;  %v2093_v21 = vrot.slane %v1927_v19, %v4035_v13  ;;  %v2119_v52 = vadd.f32 %v3651_v0, %v2111_v20  ;;  %v2120_v56 = vadd.f32 %v2112_v49, %v2053_v33 }
 0x6b0   : > { %v2122_v29 = vmax.f32 %v2114_v18, 0.0  ;;  %v2123_v63 = vmax.f32 %v2115_v23, 0.0  ;;  %v2124_v39 = vmax.f32 %v2116_v24, 0.0  ;;  %v2125_v25 = vmax.f32 %v2117_v31, 0.0 }
 0x6b1   : > { %v2113_v60 = vadd.f32 %v2104_v62, %v2093_v21  ;;  %v2126_v46 = vmax.f32 %v2118_v30, 0.0  ;;  %v2127_v13 = vmax.f32 %v2119_v52, 0.0  ;;  %v2128_v32 = vmax.f32 %v2120_v56, 0.0 }
 0x6b2   : > { %3663 = vmatprep.mubr.msk.f32.mxu1 %vm929_vm3, %v2122_v29 }
 0x6b3   : > { %3664 = vmatmul.mubr.msk.f32.vlgmr.msra.gmra.mxu1 %vm929_vm3, %v2123_v63 }
 0x6b4   : > { %3666 = vmatprep.mubr.msk.f32.mxu1 %vm929_vm3, %v2124_v39  ;;  %3687 = vmatpush3.msra.mxu1 %v4198_v12  ;;  %v2121_v12 = vadd.f32 %v3654_v4, %v2113_v60 }
 0x6b5   : > { %3688 = vmatprep.subr.mxu1 %v3805_v1 }
 0x6b6   : > { %3689 = vmatpush3.msra.mxu1 %v4203_v15  ;;  %v2129_v15 = vmax.f32 %v2121_v12, 0.0 }
 0x6b7   : > { %3667 = vmatmul.mubr.msk.f32.gmra.mxu1 %vm929_vm3, %v2125_v25  ;;  %3690 = vmatprep.subr.mxu1 %v3805_v1 }
 0x6b8   : > { %3669 = vmatprep.mubr.msk.f32.mxu1 %vm929_vm3, %v2126_v46  ;;  %3691 = vmatpush3.msra.mxu1 %v4212_v16  ;;  %v3321_v16 = vld [vmem:[%s4652_s7 + $0x11] ss:$0 sm:$0xff] }
 0x6b9   : > { %3692 = vmatprep.subr.mxu1 %v3805_v1 }
 0x6ba   : > { %3693 = vmatpush3.msra.mxu1 %v4302_v47  ;;  %v3330_v47 = vld [vmem:[%s4652_s7 + $0x12] ss:$0 sm:$0xff] }
 0x6bb   : > { %3670 = vmatmul.mubr.msk.f32.gmra.mxu1 %vm929_vm3, %v2127_v13  ;;  %3708 = vmatprep.subr.mxu1 %v3805_v1 }
 0x6bc   : > { %3672 = vmatprep.mubr.msk.f32.mxu1 %vm929_vm3, %v2128_v32 }
 0x6bf   : > { %3673 = vmatmul.mubr.msk.f32.gmra.mxu1 %vm929_vm3, %v2129_v15 }
 0x6c0   : > { %3694 = vmatprep.mubr.msk.f32.mxu1 %vm3806_vm1, %v3805_v1 }
 0x773   : > { %v3665_v58 = vpop.f32.mrf.mxu1 }
 0x774   : > { %v2236_v0 = vadd.f32 %v3665_v58, %v3321_v16 }
 0x775   : > { %v2230_v6 = vpop.f32.mrf.mxu1 }
 0x776   : > { %v2270_v7 = vmax.f32 %v2236_v0, 0.0  ;;  %v2231_v17 = vadd.f32 %v3321_v16, %v2230_v6 }
 0x777   : > { %v3668_v9 = vpop.f32.mrf.mxu1 }
 0x778   : > { %v2283_v62 = vmul.f32 %v3330_v47, %v2270_v7  ;;  %v2269_v10 = vmax.f32 %v2231_v17, 0.0  ;;  %v2246_v59 = vadd.f32 %v3668_v9, %v3321_v16 }
 0x779   : > { %v2240_v50 = vpop.f32.mrf.mxu1 }
 0x77a   : > { %v2296_v61 = vadd.f32 %v3331_v48, %v2283_v62  ;;  %v2282_v38 = vmul.f32 %v3330_v47, %v2269_v10  ;;  %v2272_v53 = vmax.f32 %v2246_v59, 0.0  ;;  %v2241_v34 = vadd.f32 %v3321_v16, %v2240_v50 }
 0x77b   : > { %v3671_v18 = vpop.f32.mrf.mxu1 }
 0x77c   : > { %v4448_v23 = vmul.f32 %v2296_v61, %v4023_v3  ;;  %v2295_v24 = vadd.f32 %v3331_v48, %v2282_v38  ;;  %v2285_v27 = vmul.f32 %v3330_v47, %v2272_v53  ;;  %v2271_v19 = vmax.f32 %v2241_v34, 0.0 }
 0x77d   : > { %v2256_v28 = vadd.f32 %v3671_v18, %v3321_v16  ;;  %v2250_v29 = vpop.f32.mrf.mxu1 }
 0x77e   : > { %v2318_v63 = vsel %vm929_vm3, %v4448_v23, 0.0  ;;  %v4453_v57 = vmul.f32 %v2295_v24, %v4011_v51  ;;  %v2298_v4 = vadd.f32 %v3331_v48, %v2285_v27  ;;  %v2284_v31 = vmul.f32 %v3330_v47, %v2271_v19 }
 0x77f   : > { %v2319_v20 = vrot.slane %v2318_v63, 4  ;;  %v2274_v39 = vmax.f32 %v2256_v28, 0.0  ;;  %v2251_v30 = vadd.f32 %v3321_v16, %v2250_v29  ;;  %v3674_v49 = vpop.f32.mrf.mxu1 }
 0x780   : > { %v2311_v3 = vsel %vm929_vm3, %v4453_v57, 0.0  ;;  %v4458_v21 = vmul.f32 %v2298_v4, %v4026_v5  ;;  %v2297_v33 = vadd.f32 %v3331_v48, %v2284_v31  ;;  %v2266_v25 = vadd.f32 %v3674_v49, %v3321_v16 }
 0x781   : > { %v2320_v52 = vadd.f32 %v2319_v20, %v2318_v63  ;;  %v2312_v60 = vrot.slane %v2311_v3, 4  ;;  %v2287_v46 = vmul.f32 %v3330_v47, %v2274_v39  ;;  %v2273_v56 = vmax.f32 %v2251_v30, 0.0  ;;  %v2260_v51 = vpop.f32.mrf.mxu1 }
 0x782   : > { %v2332_v13 = vsel %vm929_vm3, %v4458_v21, 0.0  ;;  %v4463_v12 = vmul.f32 %v2297_v33, %v4028_v8  ;;  %v2276_v32 = vmax.f32 %v2266_v25, 0.0  ;;  %v2261_v15 = vadd.f32 %v3321_v16, %v2260_v51 }
 0x783   : > { %v2321_v58 = vrot.slane %v2320_v52, 2  ;;  %v2313_v0 = vadd.f32 %v2312_v60, %v2311_v3  ;;  %v2333_v6 = vrot.slane %v2332_v13, 4  ;;  %v2300_v5 = vadd.f32 %v3331_v48, %v2287_v46 }
 0x784   : > { %v2325_v7 = vsel %vm929_vm3, %v4463_v12, 0.0  ;;  %v2286_v17 = vmul.f32 %v3330_v47, %v2273_v56  ;;  %v2289_v9 = vmul.f32 %v3330_v47, %v2276_v32  ;;  %v2275_v62 = vmax.f32 %v2261_v15, 0.0 }
 0x785   : > { %v2314_v10 = vrot.slane %v2313_v0, 2  ;;  %v2334_v59 = vadd.f32 %v2333_v6, %v2332_v13  ;;  %v2326_v50 = vrot.slane %v2325_v7, 4  ;;  %v4468_v61 = vmul.f32 %v2300_v5, %v4032_v11 }
 0x786   : > { %v2299_v8 = vadd.f32 %v3331_v48, %v2286_v17  ;;  %v2302_v38 = vadd.f32 %v3331_v48, %v2289_v9  ;;  %v2288_v53 = vmul.f32 %v3330_v47, %v2275_v62  ;;  %v2322_v16 = vadd.f32 %v2321_v58, %v2320_v52 }
 0x787   : > { %v2315_v34 = vadd.f32 %v2314_v10, %v2313_v0  ;;  %v2335_v18 = vrot.slane %v2334_v59, 2  ;;  %v2327_v24 = vadd.f32 %v2326_v50, %v2325_v7  ;;  %v2346_v27 = vsel %vm929_vm3, %v4468_v61, 0.0 }
 0x788   : > { %v4473_v19 = vmul.f32 %v2299_v8, %v4037_v14  ;;  %v4476_v28 = vmul.f32 %v2302_v38, %v4086_v37  ;;  %v2301_v29 = vadd.f32 %v3331_v48, %v2288_v53  ;;  %v2347_v4 = vrot.slane %v2346_v27, 4 }
 0x789   : > { %v2316_v63 = vrot.slane %v2315_v34, 1  ;;  %v2328_v11 = vrot.slane %v2327_v24, 2  ;;  %v2323_v39 = vrot.slane %v2322_v16, 1  ;;  %v2336_v49 = vadd.f32 %v2335_v18, %v2334_v59 }
 0x78a   : > { %v2339_v47 = vsel %vm929_vm3, %v4473_v19, 0.0  ;;  %v2360_v31 = vsel %vm929_vm3, %v4476_v28, 0.0  ;;  %v4483_v20 = vmul.f32 %v2301_v29, %v4084_v36  ;;  %v2348_v3 = vadd.f32 %v2347_v4, %v2346_v27  ;;  %v2368_v4 = vpop.permute.xlu1 %2367 }
 0x78b   : > { %v2329_v30 = vadd.f32 %v2328_v11, %v2327_v24  ;;  %v2340_v14 = vrot.slane %v2339_v47, 4  ;;  %v2361_v37 = vrot.slane %v2360_v31, 4  ;;  %v2317_v52 = vadd.f32 %v2316_v63, %v2315_v34 }
 0x78c   : > { %v2353_v48 = vsel %vm929_vm3, %v4483_v20, 0.0  ;;  %v2349_v60 = vrot.slane %v2348_v3, 2  ;;  %v2324_v51 = vadd.f32 %v2323_v39, %v2322_v16  ;;  %v2337_v36 = vrot.slane %v2336_v49, 1 }
 0x78d   : > { %v2330_v33 = vrot.slane %v2329_v30, 1  ;;  %v2341_v25 = vadd.f32 %v2340_v14, %v2339_v47  ;;  %v2362_v46 = vadd.f32 %v2361_v37, %v2360_v31  ;;  %v2354_v56 = vrot.slane %v2353_v48, 4  ;;  %v3334_v37 = vld [vmem:[%s4651_s6 + $0x40] sm:$0xff] }
 0x78e   : > { %v2350_v15 = vadd.f32 %v2349_v60, %v2348_v3  ;;  %v2379_v5 = vsel %vm1618_vm4, %v2324_v51, %v2317_v52  ;;  %v2338_v59 = vadd.f32 %v2337_v36, %v2336_v49  ;;  %v2370_v47 = vadd.f32 %v2368_v4, %v4312_v54  ;;  %v3337_v49 = vld [vmem:[%s4651_s6 + $0x58] sm:$0xff]  ;;  %v3336_v54 = vld [vmem:[%s4651_s6 + $0x50] sm:$0xff]  ;;  %v3335_v3 = vld [vmem:[%s4651_s6 + $0x48] sm:$0xff] }
 0x78f   : > { %v2331_v13 = vadd.f32 %v2330_v33, %v2329_v30  ;;  %v2342_v32 = vrot.slane %v2341_v25, 2  ;;  %v2363_v58 = vrot.slane %v2362_v46, 2  ;;  %v2355_v0 = vadd.f32 %v2354_v56, %v2353_v48  ;;  %v3349_v48 = vld [vmem:[%s4651_s6 + $0x98] sm:$0xff] }
 0x790   : > { %v2351_v62 = vrot.slane %v2350_v15, 1  ;;  %v2628_v33 = vld [vmem:[%s4653_s8 + $0x18] sm:$0xff] }
 0x791   : > { %v2343_v6 = vadd.f32 %v2342_v32, %v2341_v25  ;;  %v2364_v7 = vadd.f32 %v2363_v58, %v2362_v46  ;;  %v2356_v17 = vrot.slane %v2355_v0, 2  ;;  %v2380_v9 = vsel %vm1620_vm5, %v2331_v13, %v2379_v5  ;;  %v3348_v13 = vld [vmem:[%s4651_s6 + $0x90] sm:$0xff]  ;;  %v3342_v58 = vld [vmem:[%s4651_s6 + $0x60] sm:$0xff] }
 0x792   : > { %v2381_v16 = vsel %vm1622_vm6, %v2338_v59, %v2380_v9  ;;  %v2352_v34 = vadd.f32 %v2351_v62, %v2350_v15  ;;  %v3344_v15 = vld [vmem:[%s4651_s6 + $0x70] sm:$0xff]  ;;  %v3366_v62 = vld [vmem:[%s4652_s7 + $0xb] ss:$0 sm:$0xff] }
 0x793   : > { %v2344_v10 = vrot.slane %v2343_v6, 1  ;;  %v2357_v50 = vadd.f32 %v2356_v17, %v2355_v0  ;;  %v2365_v38 = vrot.slane %v2364_v7, 1 }
 0x795   : > { %v2345_v8 = vadd.f32 %v2344_v10, %v2343_v6  ;;  %v2358_v53 = vrot.slane %v2357_v50, 1  ;;  %v2366_v27 = vadd.f32 %v2365_v38, %v2364_v7 }
 0x797   : > { %v2382_v18 = vsel %vm1624_vm7, %v2345_v8, %v2381_v16  ;;  %v2359_v24 = vadd.f32 %v2358_v53, %v2357_v50 }
 0x798   : > { %v2383_v29 = vsel %vm1626_vm8, %v2352_v34, %v2382_v18 }
 0x799   : > { %v2384_v63 = vsel %vm1628_vm9, %v2359_v24, %v2383_v29 }
 0x79a   : > { %v2385_v11 = vsel %vm1630_vm10, %v2366_v27, %v2384_v63 }
 0x79b   : > { %3684 = vmatmul.mubr.msk.f32.vlgmr.msra.gmra.mxu0 %vm929_vm3, %v2385_v11 }
 0x79c   : > { %3705 = vmatprep.mubr.msk.f32.mxu0 %vm3806_vm1, %v3805_v1  ;;  %3698 = vmatpush3.msra.mxu0 %v3337_v49 }
 0x79d   : > { %3699 = vmatprep.subr.mxu0 %v3805_v1 }
 0x79e   : > { %3700 = vmatpush3.msra.mxu0 %v3336_v54 }
 0x79f   : > { %3701 = vmatprep.subr.mxu0 %v3805_v1 }
 0x7a0   : > { %3702 = vmatpush3.msra.mxu0 %v3335_v3 }
 0x7a1   : > { %3703 = vmatprep.subr.mxu0 %v3805_v1 }
 0x7a2   : > { %3704 = vmatpush3.msra.mxu0 %v3334_v37 }
 0x7a3   : > { %3719 = vmatprep.subr.mxu0 %v3349_v48 }
 0x85b   : > { %v2454_v31 = vpop.f32.mrf.mxu0 }
 0x85c   : > { %v2458_v39 = vadd.f32 %v2454_v31, %v2370_v47 }
 0x85d   : > { %v3685_v30 = vpop.f32.mrf.mxu0 }
 0x85e   : > { %v2459_v14 = vmax.f32 %v2458_v39, 0.0 }
 0x860   : > { %3695 = vmatmul.mubr.msk.f32.vlgmr.msra.gmra.mxu1 %vm929_vm3, %v2459_v14 }
 0x861   : > { %3716 = vmatprep.mubr.msk.f32.mxu1 %vm3806_vm1, %v3805_v1  ;;  %3709 = vmatpush3.msra.mxu1 %v2628_v33 }
 0x862   : > { %3710 = vmatprep.subr.mxu1 %v3805_v1 }
 0x920   : > { %v2529_v25 = vpop.f32.mrf.mxu1 }
 0x921   : > { %v2530_v52 = vadd.f32 %v4370_v35, %v2529_v25  ;;  %v3347_v35 = vld [vmem:[%s4651_s6 + $0x88] sm:$0xff] }
 0x922   : > { %v3696_v60 = vpop.f32.mrf.mxu1 }
 0x923   : > { %v2533_v46 = vmax.f32 %v2530_v52, 0.0 }
 0x925   : > { %v2534_v56 = vmul.f32 %v4376_v22, %v2533_v46  ;;  %v3346_v22 = vld [vmem:[%s4651_s6 + $0x80] sm:$0xff] }
 0x927   : > { %v2535_v51 = vadd.f32 %v4381_v26, %v2534_v56 }
 0x929   : > { %3706 = vmatmul.mubr.msk.f32.vlgmr.msra.gmra.mxu0 %vm929_vm3, %v2535_v51 }
 0x92a   : > { %3720 = vmatpush3.msra.mxu0 %v3349_v48  ;;  %3727 = vmatprep.mubr.msk.f32.mxu0 %vm929_vm3, %v4098_v2  ;;  %v2626_v2 = vld [vmem:[%s4653_s8 + $0x8] sm:$0xff] }
 0x92b   : > { %3721 = vmatprep.subr.mxu0 %v3348_v13 }
 0x92c   : > { %3722 = vmatpush3.msra.mxu0 %v3348_v13 }
 0x92d   : > { %3723 = vmatprep.subr.mxu0 %v3347_v35 }
 0x92e   : > { %3724 = vmatpush3.msra.mxu0 %v3347_v35 }
 0x92f   : > { %3725 = vmatprep.subr.mxu0 %v3346_v22 }
 0x930   : > { %3726 = vmatpush3.msra.mxu0 %v3346_v22  ;;  %v3367_v22 = vld [vmem:[%s4654_s9 + $0x20] ss:$0 sm:$0xff] }
 0x931   : > { %3728 = vmatmul.mubr.msk.f32.vlgmr.msra.gmra.mxu0 %vm929_vm3, %v4096_v55  ;;  %v2627_v55 = vld [vmem:[%s4653_s8 + $0x10] sm:$0xff] }
 0x932   : > { %3730 = vmatprep.mubr.msk.f32.mxu0 %vm929_vm3, %v4106_v41  ;;  %3711 = vmatpush3.msra.mxu1 %v2627_v55  ;;  %v3345_v41 = vld [vmem:[%s4651_s6 + $0x78] sm:$0xff] }
 0x933   : > { %3712 = vmatprep.subr.mxu1 %v3805_v1 }
 0x934   : > { %3713 = vmatpush3.msra.mxu1 %v2626_v2 }
 0x935   : > { %3731 = vmatmul.mubr.msk.f32.gmra.mxu0 %vm929_vm3, %v4104_v40  ;;  %v2625_v40 = vld [vmem:[%s4653_s8] sm:$0xff]  ;;  %3714 = vmatprep.subr.mxu1 %v3805_v1  ;;  %v3343_v1 = vld [vmem:[%s4651_s6 + $0x68] sm:$0xff] }
 0x936   : > { %3733 = vmatprep.mubr.msk.f32.mxu0 %vm929_vm3, %v4114_v43  ;;  %3715 = vmatpush3.msra.mxu1 %v2625_v40 }
 0x937   : > { %3739 = vmatprep.subr.mxu1 %v3345_v41 }
 0x939   : > { %3734 = vmatmul.mubr.msk.f32.gmra.mxu0 %vm929_vm3, %v4112_v42  ;;  %v2543_v42 = vpop.permute.xlu0 %2542 }
 0x93a   : > { %3736 = vmatprep.mubr.msk.f32.mxu0 %vm929_vm3, %v4120_v44  ;;  %v3339_v44 = vld [vmem:[%s4652_s7 + $0xa] ss:$0 sm:$0xff] }
 0x93d   : > { %3737 = vmatmul.mubr.msk.f32.gmra.mxu0 %vm929_vm3, %v4122_v45 }
 0x9e9   : > { %v2614_v43 = vpop.f32.mrf.mxu0 }
 0x9ea   : > { %v2615_v45 = vadd.f32 %v2614_v43, %v2543_v42 }
 0x9eb   : > { %v3707_v26 = vpop.f32.mrf.mxu0 }
 0x9ec   : > { %v2623_v32 = vadd.f32 %v3339_v44, %v2615_v45 }
 0x9ee   : > { %v2624_v36 = vmax.f32 %v2623_v32, 0.0 }
 0x9f0   : > { %3717 = vmatmul.mubr.msk.f32.vlgmr.msra.gmra.mxu1 %vm929_vm3, %v2624_v36 }
 0x9f1   : > { %3740 = vmatpush3.msra.mxu1 %v3345_v41  ;;  %3747 = vmatprep.mubr.msk.f32.mxu1 %vm929_vm3, %v4453_v57  ;;  %v2975_v57 = vld [vmem:[%s4654_s9 + $0x10] sm:$0xff] }
 0x9f2   : > { %3741 = vmatprep.subr.mxu1 %v3344_v15 }
 0x9f3   : > { %3742 = vmatpush3.msra.mxu1 %v3344_v15 }
 0x9f4   : > { %3743 = vmatprep.subr.mxu1 %v3343_v1 }
 0x9f5   : > { %3744 = vmatpush3.msra.mxu1 %v3343_v1 }
 0x9f6   : > { %3745 = vmatprep.subr.mxu1 %v3342_v58 }
 0x9f7   : > { %3746 = vmatpush3.msra.mxu1 %v3342_v58 }
 0x9f8   : > { %3748 = vmatmul.mubr.msk.f32.vlgmr.msra.gmra.mxu1 %vm929_vm3, %v4448_v23  ;;  %v2976_v23 = vld [vmem:[%s4654_s9 + $0x18] sm:$0xff] }
 0x9f9   : > { %3750 = vmatprep.mubr.msk.f32.mxu1 %vm929_vm3, %v4463_v12  ;;  %3759 = vmatprep.subr.mxu0 %v2976_v23  ;;  %v2973_v12 = vld [vmem:[%s4654_s9] sm:$0xff] }
 0x9fa   : > { %3760 = vmatpush3.msra.mxu0 %v2976_v23 }
 0x9fb   : > { %3761 = vmatprep.subr.mxu0 %v2975_v57 }
 0x9fc   : > { %3751 = vmatmul.mubr.msk.f32.gmra.mxu1 %vm929_vm3, %v4458_v21  ;;  %3762 = vmatpush3.msra.mxu0 %v2975_v57  ;;  %v2974_v21 = vld [vmem:[%s4654_s9 + $0x8] sm:$0xff] }
 0x9fd   : > { %3753 = vmatprep.mubr.msk.f32.mxu1 %vm929_vm3, %v4473_v19  ;;  %3763 = vmatprep.subr.mxu0 %v2974_v21 }
 0x9fe   : > { %3764 = vmatpush3.msra.mxu0 %v2974_v21 }
 0x9ff   : > { %3765 = vmatprep.subr.mxu0 %v2973_v12 }
 0xa00   : > { %3754 = vmatmul.mubr.msk.f32.gmra.mxu1 %vm929_vm3, %v4468_v61  ;;  %3766 = vmatpush3.msra.mxu0 %v2973_v12  ;;  %v3729_v61 = vpop.f32.mrf.mxu0 }
 0xa01   : > { %3756 = vmatprep.mubr.msk.f32.mxu1 %vm929_vm3, %v4483_v20 }
 0xa02   : > { %v2784_v19 = vpop.f32.mrf.mxu0 }
 0xa04   : > { %3757 = vmatmul.mubr.msk.f32.gmra.mxu1 %vm929_vm3, %v4476_v28  ;;  %v3340_v28 = vld [vmem:[%s4653_s8 + $0x20] ss:$0 sm:$0xff]  ;;  %v3732_v6 = vpop.f32.mrf.mxu0 }
 0xa06   : > { %v2794_v7 = vpop.f32.mrf.mxu0 }
 0xa08   : > { %v3735_v10 = vpop.f32.mrf.mxu0 }
 0xa0a   : > { %v2804_v34 = vpop.f32.mrf.mxu0 }
 0xa0c   : > { %v3738_v31 = vpop.f32.mrf.mxu0 }
 0xa0e   : > { %v2814_v33 = vpop.f32.mrf.mxu0 }
 0xab0   : > { %v2703_v20 = vpop.f32.mrf.mxu1 }
 0xab1   : > { %v2704_v0 = vadd.f32 %v3340_v28, %v2703_v20 }
 0xab2   : > { %v3718_v5 = vpop.f32.mrf.mxu1 }
 0xab3   : > { %2707 = vst.msk [vmem:[%s429_s22] sm:$0xff] %vm493_vm2, %v2704_v0 }
 0xab8   : > { %v3749_v17 = vpop.f32.mrf.mxu1 }
 0xab9   : > { %v2919_v9 = vadd.f32 %v3749_v17, %v3729_v61 }
 0xaba   : > { %v2913_v59 = vpop.f32.mrf.mxu1 }
 0xabb   : > { %v2914_v50 = vadd.f32 %v2913_v59, %v2784_v19  ;;  %v2958_v8 = vadd.f32 %v3366_v62, %v2919_v9 }
 0xabc   : > { %v3752_v38 = vpop.f32.mrf.mxu1 }
 0xabd   : > { %v2957_v53 = vadd.f32 %v3366_v62, %v2914_v50  ;;  %v2929_v16 = vadd.f32 %v3752_v38, %v3732_v6  ;;  %v2966_v29 = vmax.f32 %v2958_v8, 0.0 }
 0xabe   : > { %v2923_v18 = vpop.f32.mrf.mxu1 }
 0xabf   : > { %v2965_v24 = vmax.f32 %v2957_v53, 0.0  ;;  %v2924_v27 = vadd.f32 %v2923_v18, %v2794_v7  ;;  %v2960_v63 = vadd.f32 %v3366_v62, %v2929_v16 }
 0xac0   : > { %v3755_v11 = vpop.f32.mrf.mxu1 }
 0xac1   : > { %v2959_v4 = vadd.f32 %v3366_v62, %v2924_v27  ;;  %v2939_v47 = vadd.f32 %v3755_v11, %v3735_v10  ;;  %3767 = vmatprep.mubr.msk.f32.mxu0 %vm929_vm3, %v2965_v24  ;;  %v2968_v49 = vmax.f32 %v2960_v63, 0.0 }
 0xac2   : > { %v2933_v39 = vpop.f32.mrf.mxu1  ;;  %3768 = vmatmul.mubr.msk.f32.vlgmr.msra.gmra.mxu0 %vm929_vm3, %v2966_v29 }
 0xac3   : > { %v2967_v30 = vmax.f32 %v2959_v4, 0.0  ;;  %v2934_v14 = vadd.f32 %v2933_v39, %v2804_v34  ;;  %v2962_v54 = vadd.f32 %v3366_v62, %v2939_v47 }
 0xac4   : > { %v3758_v3 = vpop.f32.mrf.mxu1 }
 0xac5   : > { %v2961_v37 = vadd.f32 %v3366_v62, %v2934_v14  ;;  %v2949_v48 = vadd.f32 %v3758_v3, %v3738_v31  ;;  %3770 = vmatprep.mubr.msk.f32.mxu0 %vm929_vm3, %v2967_v30  ;;  %v2970_v46 = vmax.f32 %v2962_v54, 0.0 }
 0xac6   : > { %v2943_v25 = vpop.f32.mrf.mxu1  ;;  %3771 = vmatmul.mubr.msk.f32.gmra.mxu0 %vm929_vm3, %v2968_v49 }
 0xac7   : > { %v2969_v52 = vmax.f32 %v2961_v37, 0.0  ;;  %v2944_v60 = vadd.f32 %v2943_v25, %v2814_v33  ;;  %v2964_v56 = vadd.f32 %v3366_v62, %v2949_v48 }
 0xac9   : > { %v2963_v51 = vadd.f32 %v3366_v62, %v2944_v60  ;;  %3773 = vmatprep.mubr.msk.f32.mxu0 %vm929_vm3, %v2969_v52  ;;  %v2972_v35 = vmax.f32 %v2964_v56, 0.0 }
 0xaca   : > { %3774 = vmatmul.mubr.msk.f32.gmra.mxu0 %vm929_vm3, %v2970_v46 }
 0xacb   : > { %v2971_v13 = vmax.f32 %v2963_v51, 0.0 }
 0xacd   : > { %3776 = vmatprep.mubr.msk.f32.mxu0 %vm929_vm3, %v2971_v13 }
 0xace   : > { %3777 = vmatmul.mubr.msk.f32.gmra.mxu0 %vm929_vm3, %v2972_v35 }
 0xb82   : > { %v3769_v55 = vpop.f32.mrf.mxu0 }
 0xb83   : > { %v3078_v2 = vadd.f32 %v3769_v55, %v3367_v22 }
 0xb84   : > { %v3072_v40 = vpop.f32.mrf.mxu0 }
 0xb85   : > { %3112 = vst.msk [vmem:[%s434_s12 + $0x8] sm:$0xff] %vm493_vm2, %v3078_v2  ;;  %v3073_v41 = vadd.f32 %v3367_v22, %v3072_v40 }
 0xb86   : > { %v3772_v42 = vpop.f32.mrf.mxu0 }
 0xb87   : > { %3111 = vst.msk [vmem:[%s434_s12] sm:$0xff] %vm493_vm2, %v3073_v41  ;;  %v3088_v43 = vadd.f32 %v3772_v42, %v3367_v22 }
 0xb88   : > { %v3082_v44 = vpop.f32.mrf.mxu0 }
 0xb89   : > { %3114 = vst.msk [vmem:[%s434_s12 + $0x18] sm:$0xff] %vm493_vm2, %v3088_v43  ;;  %v3083_v45 = vadd.f32 %v3367_v22, %v3082_v44 }
 0xb8a   : > { %v3775_v26 = vpop.f32.mrf.mxu0 }
 0xb8b   : > { %3113 = vst.msk [vmem:[%s434_s12 + $0x10] sm:$0xff] %vm493_vm2, %v3083_v45  ;;  %v3098_v32 = vadd.f32 %v3775_v26, %v3367_v22 }
 0xb8c   : > { %v3092_v36 = vpop.f32.mrf.mxu0 }
 0xb8d   : > { %3116 = vst.msk [vmem:[%s434_s12 + $0x28] sm:$0xff] %vm493_vm2, %v3098_v32  ;;  %v3093_v15 = vadd.f32 %v3367_v22, %v3092_v36 }
 0xb8e   : > { %v3778_v1 = vpop.f32.mrf.mxu0 }
 0xb8f   : > { %3115 = vst.msk [vmem:[%s434_s12 + $0x20] sm:$0xff] %vm493_vm2, %v3093_v15  ;;  %v3108_v58 = vadd.f32 %v3778_v1, %v3367_v22 }
 0xb90   : > { %v3102_v23 = vpop.f32.mrf.mxu0 }
 0xb91   : > { %3118 = vst.msk [vmem:[%s434_s12 + $0x38] sm:$0xff] %vm493_vm2, %v3108_v58  ;;  %v3103_v57 = vadd.f32 %v3367_v22, %v3102_v23 }
 0xb93   : > { %3117 = vst.msk [vmem:[%s434_s12 + $0x30] sm:$0xff] %vm493_vm2, %v3103_v57 }
 0xb94 PF: > { %s22_s17 = sadd.s32 1, %s3802_s17  }
 0xb95   : > { %p19_p4 = scmp.ge.s32.totalorder %s22_s17, 4  }
 0xb97   :  { %21 = sbr.rel (!%p19_p4) target bundleno = 1 (0x1), region = 117 }

</bundles_post_ra>
